<compile_context>
chip_gen: v5e
topology: v5e:2x2
jax: 0.10.0
libtpu: 0.0.40
codegen_flags: <defaults>
</compile_context>

<pallas_src>
import functools
import math

import jax
import jax.numpy as jnp
from jax.experimental import pallas as pl
from jax.experimental.pallas import tpu as pltpu

POOL = 7                                   # MultiScaleRoIAlign output_size
BBOX_REG_W = (10.0, 10.0, 5.0, 5.0)        # config.TRAIN.ROI.BBOX_REG_WEIGHTS default
BBOX_XFORM_CLIP = math.log(1000.0 / 16.0)


def _round_up(x, m):
    return (x + m - 1) // m * m


# ------------------------- Pallas kernel -------------------------

def _head_decode_kernel(x_ref, w6_ref, b6_ref, w7_ref, b7_ref, wcb_ref, bcb_ref,
                        prop_ref, out_ref, boxes_ref, acc_ref, *, num_cls):
    """Fused TwoFCHead + BoxPredictor + class-0 BoxCoder.decode.

    Grid: (R tiles, fc6 reduction tiles).  fc6 is accumulated in f32 scratch
    across the reduction axis; everything downstream runs once, in the last
    reduction step, on the finished fc6 activation for this R tile.
    """
    k = pl.program_id(1)

    @pl.when(k == 0)
    def _():
        acc_ref[...] = jnp.zeros_like(acc_ref)

    # fc6 partial product (bf16 x bf16 -> f32 accumulate on the MXU).
    acc_ref[...] += jnp.dot(x_ref[...], w6_ref[...],
                            preferred_element_type=jnp.float32)

    @pl.when(k == pl.num_programs(1) - 1)
    def _():
        # fc6 epilogue in f32, cast to bf16 only for the next matmul.
        h = jnp.maximum(acc_ref[...] + b6_ref[...], 0.0).astype(jnp.bfloat16)
        # fc7 + relu.
        h2 = jnp.dot(h, w7_ref[...], preferred_element_type=jnp.float32) + b7_ref[...]
        h2 = jnp.maximum(h2, 0.0).astype(jnp.bfloat16)
        # Fused [cls_score | bbox_pred] matmul -> one lane-dense output slab.
        out = jnp.dot(h2, wcb_ref[...], preferred_element_type=jnp.float32) + bcb_ref[...]
        out_ref[...] = out

        # ---- BoxCoder.decode for class 0 (what RoIHead.forward returns) ----
        boxes = prop_ref[...]                              # [tm, 4] proposals
        d = out[:, num_cls:num_cls + 4]                    # class-0 deltas
        widths = boxes[:, 2:3] - boxes[:, 0:1]
        heights = boxes[:, 3:4] - boxes[:, 1:2]
        ctr_x = boxes[:, 0:1] + 0.5 * widths
        ctr_y = boxes[:, 1:2] + 0.5 * heights
        wx, wy, ww, wh = BBOX_REG_W
        dx = d[:, 0:1] / wx
        dy = d[:, 1:2] / wy
        dw = jnp.minimum(d[:, 2:3] / ww, BBOX_XFORM_CLIP)
        dh = jnp.minimum(d[:, 3:4] / wh, BBOX_XFORM_CLIP)
        pcx = dx * widths + ctr_x
        pcy = dy * heights + ctr_y
        pw = jnp.exp(dw) * widths
        ph = jnp.exp(dh) * heights
        boxes_ref[...] = jnp.concatenate(
            [pcx - 0.5 * pw, pcy - 0.5 * ph, pcx + 0.5 * pw, pcy + 0.5 * ph],
            axis=1)


# ------------------------- pallas_call wrapper -------------------------

def prepare_params(params, *, tk_max=512):
    """Fuse cls/bbox predictor weights, pad to MXU-friendly shapes, cast to bf16."""
    w6, b6 = params["w6"], params["b6"]
    w7, b7 = params["w7"], params["b7"]
    wc, bc = params["wc"], params["bc"]
    wb, bb = params["wb"], params["bb"]
    in_feat, F = w6.shape
    K = wc.shape[1]
    NO = K + 4 * K                                   # cls + per-class deltas

    tk = min(tk_max, _round_up(in_feat, 128))        # fc6 reduction tile
    in_pad = _round_up(in_feat, tk)
    Fpad = _round_up(F, 128)
    P = _round_up(NO, 128)                           # lane-dense fused output

    w6_p = jnp.zeros((in_pad, Fpad), jnp.bfloat16).at[:in_feat, :F].set(
        w6.astype(jnp.bfloat16))
    b6_p = jnp.zeros((1, Fpad), jnp.float32).at[:, :F].set(b6)
    w7_p = jnp.zeros((Fpad, Fpad), jnp.bfloat16).at[:F, :F].set(
        w7.astype(jnp.bfloat16))
    b7_p = jnp.zeros((1, Fpad), jnp.float32).at[:, :F].set(b7)
    wcb = jnp.concatenate([wc, wb], axis=1)
    bcb = jnp.concatenate([bc, bb], axis=1)
    wcb_p = jnp.zeros((Fpad, P), jnp.bfloat16).at[:F, :NO].set(
        wcb.astype(jnp.bfloat16))
    bcb_p = jnp.zeros((1, P), jnp.float32).at[:, :NO].set(bcb)

    return dict(w6=w6_p, b6=b6_p, w7=w7_p, b7=b7_p, wcb=wcb_p, bcb=bcb_p,
                tk=tk, in_pad=in_pad, in_feat=in_feat, num_classes=K)


def box_head_and_predictor(x, proposals_cat, prep, *, tm=128):
    """x: [R, in_feat] f32 pooled features; proposals_cat: [R, 4].

    Returns (class_logits [R, K], box_regression [R, 4K], pred_boxes0 [R, 4]).
    """
    R = x.shape[0]
    K = prep["num_classes"]
    tk, in_pad, in_feat = prep["tk"], prep["in_pad"], prep["in_feat"]
    Fpad = prep["w7"].shape[0]
    P = prep["wcb"].shape[1]

    # Pad rows to the MXU tile and the reduction dim to a multiple of tk.
    Rpad = _round_up(max(R, 1), tm)
    x_p = jnp.zeros((Rpad, in_pad), jnp.bfloat16).at[:R, :in_feat].set(
        x.astype(jnp.bfloat16))
    prop_p = jnp.zeros((Rpad, 4), jnp.float32).at[:R].set(
        proposals_cat.astype(jnp.float32))

    grid = (Rpad // tm, in_pad // tk)
    kernel = functools.partial(_head_decode_kernel, num_cls=K)

    out, boxes0 = pl.pallas_call(
        kernel,
        out_shape=(jax.ShapeDtypeStruct((Rpad, P), jnp.float32),
                   jax.ShapeDtypeStruct((Rpad, 4), jnp.float32)),
        grid_spec=pltpu.PrefetchScalarGridSpec(
            num_scalar_prefetch=0,
            grid=grid,
            in_specs=[
                pl.BlockSpec((tm, tk), lambda i, k: (i, k)),      # x tile (streamed)
                pl.BlockSpec((tk, Fpad), lambda i, k: (k, 0)),    # w6 tile (streamed)
                pl.BlockSpec((1, Fpad), lambda i, k: (0, 0)),     # b6 (resident)
                pl.BlockSpec((Fpad, Fpad), lambda i, k: (0, 0)),  # w7 (resident)
                pl.BlockSpec((1, Fpad), lambda i, k: (0, 0)),     # b7 (resident)
                pl.BlockSpec((Fpad, P), lambda i, k: (0, 0)),     # wc|wb fused (resident)
                pl.BlockSpec((1, P), lambda i, k: (0, 0)),        # bc|bb fused (resident)
                pl.BlockSpec((tm, 4), lambda i, k: (i, 0)),       # proposals tile
            ],
            out_specs=[
                pl.BlockSpec((tm, P), lambda i, k: (i, 0)),       # fused logits|deltas
                pl.BlockSpec((tm, 4), lambda i, k: (i, 0)),       # class-0 decoded boxes
            ],
            scratch_shapes=[pltpu.VMEM((tm, Fpad), jnp.float32)], # fc6 accumulator
        ),
        compiler_params=pltpu.CompilerParams(
            dimension_semantics=("parallel", "arbitrary")),
    )(x_p, prep["w6"], prep["b6"], prep["w7"], prep["b7"],
      prep["wcb"], prep["bcb"], prop_p)

    class_logits = out[:R, :K]
    box_regression = out[:R, K:K + 4 * K]
    pred_boxes0 = boxes0[:R]
    return class_logits, box_regression, pred_boxes0


# ------------------------- plain-JAX glue -------------------------

def roi_align(feat, rois, output_size, scale_x, scale_y):
    """Single-image single-level RoIAlign (bilinear, 1 sample at each bin center).

    feat: [C, H, W]; rois: [R, 4] (x1, y1, x2, y2) in image coordinates.
    """
    # TODO(synk): MultiScaleRoIAlign FPN level assignment and sampling_ratio=0
    # adaptive multi-sample grid are simplified to single-level, 1 sample/bin.
    C, H, W = feat.shape
    x1 = rois[:, 0] * scale_x
    y1 = rois[:, 1] * scale_y
    x2 = rois[:, 2] * scale_x
    y2 = rois[:, 3] * scale_y
    bin_w = (x2 - x1) / output_size
    bin_h = (y2 - y1) / output_size
    grid = jnp.arange(output_size, dtype=jnp.float32) + 0.5
    ys = y1[:, None] + grid[None, :] * bin_h[:, None]   # [R, S]
    xs = x1[:, None] + grid[None, :] * bin_w[:, None]   # [R, S]
    y = jnp.clip(ys, 0.0, H - 1.0)
    x = jnp.clip(xs, 0.0, W - 1.0)
    y0 = jnp.floor(y).astype(jnp.int32)
    x0 = jnp.floor(x).astype(jnp.int32)
    y1i = jnp.minimum(y0 + 1, H - 1)
    x1i = jnp.minimum(x0 + 1, W - 1)
    ly = y - y0.astype(jnp.float32)
    lx = x - x0.astype(jnp.float32)

    def gather(yi, xi):
        # out[c, r, i, j] = feat[c, yi[r, i], xi[r, j]]
        return feat[:, yi[:, :, None], xi[:, None, :]]

    w00 = ((1.0 - ly)[:, :, None] * (1.0 - lx)[:, None, :])[None]
    w01 = ((1.0 - ly)[:, :, None] * lx[:, None, :])[None]
    w10 = (ly[:, :, None] * (1.0 - lx)[:, None, :])[None]
    w11 = (ly[:, :, None] * lx[:, None, :])[None]
    val = (gather(y0, x0) * w00 + gather(y0, x1i) * w01 +
           gather(y1i, x0) * w10 + gather(y1i, x1i) * w11)   # [C, R, S, S]
    return jnp.transpose(val, (1, 0, 2, 3))                  # [R, C, S, S]


def roi_head_forward(feat_dict, proposals, image_metas, prep):
    """Eval-mode RoIHead.forward."""
    image_shapes = image_metas["ori_sizes"]
    feats = feat_dict[0]   # level-0 feature map, NCHW
    # TODO(synk): training branch (add_gt_proposals / Assigner / BalancedSampler /
    # losses) not implemented; only the inference forward path is reproduced.
    # TODO(synk): roi_align gather could itself become a Pallas kernel with
    # PrefetchScalarGridSpec (bin indices as scalar prefetch) at production sizes.

    pooled = []
    for i, props in enumerate(proposals):
        h_img, w_img = image_shapes[i]
        scale_x = feats.shape[-1] / float(w_img)
        scale_y = feats.shape[-2] / float(h_img)
        pooled.append(roi_align(feats[i], props, POOL, scale_x, scale_y))
    box_features = jnp.concatenate(pooled, axis=0)                    # [R, C, 7, 7]
    box_features = box_features.reshape(box_features.shape[0], -1)    # [R, C*49]

    proposals_concated = jnp.concatenate(proposals, axis=0)           # [R, 4]
    class_logits, box_regression, pred_boxes0 = box_head_and_predictor(
        box_features, proposals_concated, prep)

    boxes_per_image = [int(p.shape[0]) for p in proposals]
    splits, start = [], 0
    for n in boxes_per_image:
        splits.append(pred_boxes0[start:start + n])
        start += n

    return {"pred_proposals": splits,
            "class_logits": class_logits,
            "box_regression": box_regression,
            "proposals": proposals}


def init_params(key, in_feat, fc_feat, num_classes_plus_bg):
    ks = jax.random.split(key, 8)

    def lin(kw, kb, fin, fout):
        w = jax.random.normal(kw, (fin, fout), jnp.float32) * 0.02
        b = jax.random.normal(kb, (1, fout), jnp.float32) * 0.01
        return w, b

    w6, b6 = lin(ks[0], ks[1], in_feat, fc_feat)
    w7, b7 = lin(ks[2], ks[3], fc_feat, fc_feat)
    wc, bc = lin(ks[4], ks[5], fc_feat, num_classes_plus_bg)
    wb, bb = lin(ks[6], ks[7], fc_feat, num_classes_plus_bg * 4)
    return dict(w6=w6, b6=b6, w7=w7, b7=b7, wc=wc, bc=bc, wb=wb, bb=bb)


if __name__ == "__main__":
    key = jax.random.PRNGKey(0)
    N, C, Hf, Wf = 2, 4, 16, 16        # batch, in_channels, feature-map spatial
    H_img, W_img = 64, 64              # original image sizes
    num_classes = 3                    # foreground classes; predictor uses +1 (bg)
    fc_feat = 128                      # small stand-in for the module's 1024
    props_per_img = 8                  # proposals per image -> R = 16 total

    k_feat, k_box, k_par = jax.random.split(key, 3)
    feat_dict = {0: jax.random.normal(k_feat, (N, C, Hf, Wf), jnp.float32)}

    # deterministic proposals in image coordinates (x1, y1, x2, y2)
    kb = jax.random.split(k_box, N)
    proposals = []
    for i in range(N):
        xy = jax.random.uniform(kb[i], (props_per_img, 2),
                                minval=0.0, maxval=float(W_img - 8))
        wh = jax.random.uniform(jax.random.fold_in(kb[i], 1), (props_per_img, 2),
                                minval=4.0, maxval=24.0)
        x2y2 = jnp.minimum(xy + wh, float(W_img - 1))
        proposals.append(jnp.concatenate([xy, x2y2], axis=1).astype(jnp.float32))

    image_metas = {"ori_sizes": [(H_img, W_img)] * N}
    params = init_params(k_par, C * POOL * POOL, fc_feat, num_classes + 1)
    prep = prepare_params(params)

    result = roi_head_forward(feat_dict, proposals, image_metas, prep)

    jax.block_until_ready(result["class_logits"])
    jax.block_until_ready(result["box_regression"])
    for pb in result["pred_proposals"]:
        jax.block_until_ready(pb)

    assert result["class_logits"].shape == (N * props_per_img, num_classes + 1)
    assert result["box_regression"].shape == (N * props_per_img, (num_classes + 1) * 4)
    assert all(pb.shape == (props_per_img, 4) for pb in result["pred_proposals"])
    print("KERNEL_OK")
</pallas_src>

<mosaic_0001>
module attributes {stable_mosaic.version = 11 : i64} {
  func.func @_head_decode_kernel(%arg0: i32, %arg1: i32, %arg2: memref<128x256xbf16, #tpu.memory_space<vmem>>, %arg3: memref<256x128xbf16, #tpu.memory_space<vmem>>, %arg4: memref<1x128xf32, #tpu.memory_space<vmem>>, %arg5: memref<128x128xbf16, #tpu.memory_space<vmem>>, %arg6: memref<1x128xf32, #tpu.memory_space<vmem>>, %arg7: memref<128x128xbf16, #tpu.memory_space<vmem>>, %arg8: memref<1x128xf32, #tpu.memory_space<vmem>>, %arg9: memref<128x4xf32, #tpu.memory_space<vmem>>, %arg10: memref<128x128xf32, #tpu.memory_space<vmem>>, %arg11: memref<128x4xf32, #tpu.memory_space<vmem>>, %arg12: memref<128x128xf32, #tpu.memory_space<vmem>>) attributes {dimension_semantics = [#tpu.dimension_semantics<parallel>, #tpu.dimension_semantics<arbitrary>], iteration_bounds = array<i64: 1, 1>, scalar_prefetch = 0 : i64, scratch_operands = 1 : i64, tpu.core_type = #tpu.core_type<tc>, window_params = [{transform_indices = @transform_0, window_bounds = array<i64: 128, 256>}, {transform_indices = @transform_1, window_bounds = array<i64: 256, 128>}, {pipeline_mode = #tpu.pipeline_mode<synchronous>, transform_indices = @transform_2, window_bounds = array<i64: 1, 128>}, {pipeline_mode = #tpu.pipeline_mode<synchronous>, transform_indices = @transform_3, window_bounds = array<i64: 128, 128>}, {pipeline_mode = #tpu.pipeline_mode<synchronous>, transform_indices = @transform_4, window_bounds = array<i64: 1, 128>}, {pipeline_mode = #tpu.pipeline_mode<synchronous>, transform_indices = @transform_5, window_bounds = array<i64: 128, 128>}, {pipeline_mode = #tpu.pipeline_mode<synchronous>, transform_indices = @transform_6, window_bounds = array<i64: 1, 128>}, {transform_indices = @transform_7, window_bounds = array<i64: 128, 4>}, {transform_indices = @transform_8, window_bounds = array<i64: 128, 128>}, {transform_indices = @transform_9, window_bounds = array<i64: 128, 4>}]} {
    %c0_i32 = arith.constant 0 : i32
    %0 = arith.cmpi eq, %arg1, %c0_i32 : i32
    %1 = arith.extui %0 : i1 to i32
    %c0_i32_0 = arith.constant 0 : i32
    %2 = arith.cmpi ne, %1, %c0_i32_0 : i32
    scf.if %2 {
      %cst_10 = arith.constant 0.000000e+00 : f32
      %12 = vector.broadcast %cst_10 : f32 to vector<128x128xf32>
      %c0_11 = arith.constant 0 : index
      %c0_12 = arith.constant 0 : index
      %13 = vector.load %arg12[%c0_11, %c0_12] : memref<128x128xf32, #tpu.memory_space<vmem>>, vector<128x128xf32>
      tpu.vector_store %arg12[%c0_11, %c0_12], %12 {strides = array<i32>} : memref<128x128xf32, #tpu.memory_space<vmem>>, vector<128x128xf32>,
    } else {
    }
    %c0 = arith.constant 0 : index
    %c0_1 = arith.constant 0 : index
    %3 = vector.load %arg12[%c0, %c0_1] : memref<128x128xf32, #tpu.memory_space<vmem>>, vector<128x128xf32>
    %c0_2 = arith.constant 0 : index
    %c0_3 = arith.constant 0 : index
    %4 = vector.load %arg2[%c0_2, %c0_3] : memref<128x256xbf16, #tpu.memory_space<vmem>>, vector<128x256xbf16>
    %c0_4 = arith.constant 0 : index
    %c0_5 = arith.constant 0 : index
    %5 = vector.load %arg3[%c0_4, %c0_5] : memref<256x128xbf16, #tpu.memory_space<vmem>>, vector<256x128xbf16>
    %cst = arith.constant dense<0.000000e+00> : vector<128x128xf32>
    %6 = tpu.matmul %4, %5, %cst {dimension_numbers = #tpu.dot_dimension_numbers<[1], [0], [0], [1], [0, 0, 1, 1], [], []>} : vector<128x256xbf16>, vector<256x128xbf16>, vector<128x128xf32> -> vector<128x128xf32>
    %7 = arith.addf %3, %6 : vector<128x128xf32>
    %c0_6 = arith.constant 0 : index
    %c0_7 = arith.constant 0 : index
    %8 = vector.load %arg12[%c0_6, %c0_7] : memref<128x128xf32, #tpu.memory_space<vmem>>, vector<128x128xf32>
    tpu.vector_store %arg12[%c0_6, %c0_7], %7 {strides = array<i32>} : memref<128x128xf32, #tpu.memory_space<vmem>>, vector<128x128xf32>,
    %c0_i32_8 = arith.constant 0 : i32
    %9 = arith.cmpi eq, %arg1, %c0_i32_8 : i32
    %10 = arith.extui %9 : i1 to i32
    %c0_i32_9 = arith.constant 0 : i32
    %11 = arith.cmpi ne, %10, %c0_i32_9 : i32
    scf.if %11 {
      %c0_10 = arith.constant 0 : index
      %c0_11 = arith.constant 0 : index
      %12 = vector.load %arg12[%c0_10, %c0_11] : memref<128x128xf32, #tpu.memory_space<vmem>>, vector<128x128xf32>
      %c0_12 = arith.constant 0 : index
      %c0_13 = arith.constant 0 : index
      %13 = vector.load %arg4[%c0_12, %c0_13] : memref<1x128xf32, #tpu.memory_space<vmem>>, vector<1x128xf32>
      %14 = vector.broadcast %13 : vector<1x128xf32> to vector<128x128xf32>
      %15 = arith.addf %12, %14 : vector<128x128xf32>
      %cst_14 = arith.constant 0.000000e+00 : f32
      %16 = vector.broadcast %cst_14 : f32 to vector<128x128xf32>
      %17 = arith.maximumf %15, %16 : vector<128x128xf32>
      %18 = arith.truncf %17 : vector<128x128xf32> to vector<128x128xbf16>
      %c0_15 = arith.constant 0 : index
      %c0_16 = arith.constant 0 : index
      %19 = vector.load %arg5[%c0_15, %c0_16] : memref<128x128xbf16, #tpu.memory_space<vmem>>, vector<128x128xbf16>
      %cst_17 = arith.constant dense<0.000000e+00> : vector<128x128xf32>
      %20 = tpu.matmul %18, %19, %cst_17 {dimension_numbers = #tpu.dot_dimension_numbers<[1], [0], [0], [1], [0, 0, 1, 1], [], []>} : vector<128x128xbf16>, vector<128x128xbf16>, vector<128x128xf32> -> vector<128x128xf32>
      %c0_18 = arith.constant 0 : index
      %c0_19 = arith.constant 0 : index
      %21 = vector.load %arg6[%c0_18, %c0_19] : memref<1x128xf32, #tpu.memory_space<vmem>>, vector<1x128xf32>
      %22 = vector.broadcast %21 : vector<1x128xf32> to vector<128x128xf32>
      %23 = arith.addf %20, %22 : vector<128x128xf32>
      %cst_20 = arith.constant 0.000000e+00 : f32
      %24 = vector.broadcast %cst_20 : f32 to vector<128x128xf32>
      %25 = arith.maximumf %23, %24 : vector<128x128xf32>
      %26 = arith.truncf %25 : vector<128x128xf32> to vector<128x128xbf16>
      %c0_21 = arith.constant 0 : index
      %c0_22 = arith.constant 0 : index
      %27 = vector.load %arg7[%c0_21, %c0_22] : memref<128x128xbf16, #tpu.memory_space<vmem>>, vector<128x128xbf16>
      %cst_23 = arith.constant dense<0.000000e+00> : vector<128x128xf32>
      %28 = tpu.matmul %26, %27, %cst_23 {dimension_numbers = #tpu.dot_dimension_numbers<[1], [0], [0], [1], [0, 0, 1, 1], [], []>} : vector<128x128xbf16>, vector<128x128xbf16>, vector<128x128xf32> -> vector<128x128xf32>
      %c0_24 = arith.constant 0 : index
      %c0_25 = arith.constant 0 : index
      %29 = vector.load %arg8[%c0_24, %c0_25] : memref<1x128xf32, #tpu.memory_space<vmem>>, vector<1x128xf32>
      %30 = vector.broadcast %29 : vector<1x128xf32> to vector<128x128xf32>
      %31 = arith.addf %28, %30 : vector<128x128xf32>
      %c0_26 = arith.constant 0 : index
      %c0_27 = arith.constant 0 : index
      %32 = vector.load %arg10[%c0_26, %c0_27] : memref<128x128xf32, #tpu.memory_space<vmem>>, vector<128x128xf32>
      tpu.vector_store %arg10[%c0_26, %c0_27], %31 {strides = array<i32>} : memref<128x128xf32, #tpu.memory_space<vmem>>, vector<128x128xf32>,
      %c0_28 = arith.constant 0 : index
      %c0_29 = arith.constant 0 : index
      %33 = vector.load %arg9[%c0_28, %c0_29] : memref<128x4xf32, #tpu.memory_space<vmem>>, vector<128x4xf32>
      %34 = vector.extract_strided_slice %31 {offsets = [0, 4], sizes = [128, 4], strides = [1, 1]} : vector<128x128xf32> to vector<128x4xf32>
      %35 = vector.extract_strided_slice %33 {offsets = [0, 2], sizes = [128, 1], strides = [1, 1]} : vector<128x4xf32> to vector<128x1xf32>
      %36 = vector.extract_strided_slice %33 {offsets = [0, 0], sizes = [128, 1], strides = [1, 1]} : vector<128x4xf32> to vector<128x1xf32>
      %37 = arith.subf %35, %36 : vector<128x1xf32>
      %38 = vector.extract_strided_slice %33 {offsets = [0, 3], sizes = [128, 1], strides = [1, 1]} : vector<128x4xf32> to vector<128x1xf32>
      %39 = vector.extract_strided_slice %33 {offsets = [0, 1], sizes = [128, 1], strides = [1, 1]} : vector<128x4xf32> to vector<128x1xf32>
      %40 = arith.subf %38, %39 : vector<128x1xf32>
      %41 = vector.extract_strided_slice %33 {offsets = [0, 0], sizes = [128, 1], strides = [1, 1]} : vector<128x4xf32> to vector<128x1xf32>
      %cst_30 = arith.constant 5.000000e-01 : f32
      %42 = vector.broadcast %cst_30 : f32 to vector<128x1xf32>
      %43 = arith.mulf %42, %37 : vector<128x1xf32>
      %44 = arith.addf %41, %43 : vector<128x1xf32>
      %45 = vector.extract_strided_slice %33 {offsets = [0, 1], sizes = [128, 1], strides = [1, 1]} : vector<128x4xf32> to vector<128x1xf32>
      %cst_31 = arith.constant 5.000000e-01 : f32
      %46 = vector.broadcast %cst_31 : f32 to vector<128x1xf32>
      %47 = arith.mulf %46, %40 : vector<128x1xf32>
      %48 = arith.addf %45, %47 : vector<128x1xf32>
      %49 = vector.extract_strided_slice %34 {offsets = [0, 0], sizes = [128, 1], strides = [1, 1]} : vector<128x4xf32> to vector<128x1xf32>
      %cst_32 = arith.constant 1.000000e+01 : f32
      %50 = vector.broadcast %cst_32 : f32 to vector<128x1xf32>
      %51 = arith.divf %49, %50 : vector<128x1xf32>
      %52 = vector.extract_strided_slice %34 {offsets = [0, 1], sizes = [128, 1], strides = [1, 1]} : vector<128x4xf32> to vector<128x1xf32>
      %cst_33 = arith.constant 1.000000e+01 : f32
      %53 = vector.broadcast %cst_33 : f32 to vector<128x1xf32>
      %54 = arith.divf %52, %53 : vector<128x1xf32>
      %55 = vector.extract_strided_slice %34 {offsets = [0, 2], sizes = [128, 1], strides = [1, 1]} : vector<128x4xf32> to vector<128x1xf32>
      %cst_34 = arith.constant 5.000000e+00 : f32
      %56 = vector.broadcast %cst_34 : f32 to vector<128x1xf32>
      %57 = arith.divf %55, %56 : vector<128x1xf32>
      %cst_35 = arith.constant 4.13516665 : f32
      %58 = vector.broadcast %cst_35 : f32 to vector<128x1xf32>
      %59 = arith.minimumf %57, %58 : vector<128x1xf32>
      %60 = vector.extract_strided_slice %34 {offsets = [0, 3], sizes = [128, 1], strides = [1, 1]} : vector<128x4xf32> to vector<128x1xf32>
      %cst_36 = arith.constant 5.000000e+00 : f32
      %61 = vector.broadcast %cst_36 : f32 to vector<128x1xf32>
      %62 = arith.divf %60, %61 : vector<128x1xf32>
      %cst_37 = arith.constant 4.13516665 : f32
      %63 = vector.broadcast %cst_37 : f32 to vector<128x1xf32>
      %64 = arith.minimumf %62, %63 : vector<128x1xf32>
      %65 = arith.mulf %51, %37 : vector<128x1xf32>
      %66 = arith.addf %65, %44 : vector<128x1xf32>
      %67 = arith.mulf %54, %40 : vector<128x1xf32>
      %68 = arith.addf %67, %48 : vector<128x1xf32>
      %69 = math.exp %59 : vector<128x1xf32>
      %70 = arith.mulf %69, %37 : vector<128x1xf32>
      %71 = math.exp %64 : vector<128x1xf32>
      %72 = arith.mulf %71, %40 : vector<128x1xf32>
      %cst_38 = arith.constant 5.000000e-01 : f32
      %73 = vector.broadcast %cst_38 : f32 to vector<128x1xf32>
      %74 = arith.mulf %73, %70 : vector<128x1xf32>
      %75 = arith.subf %66, %74 : vector<128x1xf32>
      %cst_39 = arith.constant 5.000000e-01 : f32
      %76 = vector.broadcast %cst_39 : f32 to vector<128x1xf32>
      %77 = arith.mulf %76, %72 : vector<128x1xf32>
      %78 = arith.subf %68, %77 : vector<128x1xf32>
      %cst_40 = arith.constant 5.000000e-01 : f32
      %79 = vector.broadcast %cst_40 : f32 to vector<128x1xf32>
      %80 = arith.mulf %79, %70 : vector<128x1xf32>
      %81 = arith.addf %66, %80 : vector<128x1xf32>
      %cst_41 = arith.constant 5.000000e-01 : f32
      %82 = vector.broadcast %cst_41 : f32 to vector<128x1xf32>
      %83 = arith.mulf %82, %72 : vector<128x1xf32>
      %84 = arith.addf %68, %83 : vector<128x1xf32>
      %85 = tpu.concatenate %75, %78, %81, %84 in 1 : vector<128x1xf32>, vector<128x1xf32>, vector<128x1xf32>, vector<128x1xf32> -> vector<128x4xf32>
      %c0_42 = arith.constant 0 : index
      %c0_43 = arith.constant 0 : index
      %86 = vector.load %arg11[%c0_42, %c0_43] : memref<128x4xf32, #tpu.memory_space<vmem>>, vector<128x4xf32>
      tpu.vector_store %arg11[%c0_42, %c0_43], %85 {strides = array<i32>} : memref<128x4xf32, #tpu.memory_space<vmem>>, vector<128x4xf32>,
    } else {
    }
    return
  }
  func.func @transform_0(%arg0: i32, %arg1: i32) -> (i32, i32) {
    %c0_i32 = arith.constant 0 : i32
    return %arg0, %arg1 : i32, i32
  }
  func.func @transform_1(%arg0: i32, %arg1: i32) -> (i32, i32) {
    %c0_i32 = arith.constant 0 : i32
    %c0_i32_0 = arith.constant 0 : i32
    return %arg1, %c0_i32 : i32, i32
  }
  func.func @transform_2(%arg0: i32, %arg1: i32) -> (i32, i32) {
    %c0_i32 = arith.constant 0 : i32
    %c0_i32_0 = arith.constant 0 : i32
    %c0_i32_1 = arith.constant 0 : i32
    return %c0_i32, %c0_i32_0 : i32, i32
  }
  func.func @transform_3(%arg0: i32, %arg1: i32) -> (i32, i32) {
    %c0_i32 = arith.constant 0 : i32
    %c0_i32_0 = arith.constant 0 : i32
    %c0_i32_1 = arith.constant 0 : i32
    return %c0_i32, %c0_i32_0 : i32, i32
  }
  func.func @transform_4(%arg0: i32, %arg1: i32) -> (i32, i32) {
    %c0_i32 = arith.constant 0 : i32
    %c0_i32_0 = arith.constant 0 : i32
    %c0_i32_1 = arith.constant 0 : i32
    return %c0_i32, %c0_i32_0 : i32, i32
  }
  func.func @transform_5(%arg0: i32, %arg1: i32) -> (i32, i32) {
    %c0_i32 = arith.constant 0 : i32
    %c0_i32_0 = arith.constant 0 : i32
    %c0_i32_1 = arith.constant 0 : i32
    return %c0_i32, %c0_i32_0 : i32, i32
  }
  func.func @transform_6(%arg0: i32, %arg1: i32) -> (i32, i32) {
    %c0_i32 = arith.constant 0 : i32
    %c0_i32_0 = arith.constant 0 : i32
    %c0_i32_1 = arith.constant 0 : i32
    return %c0_i32, %c0_i32_0 : i32, i32
  }
  func.func @transform_7(%arg0: i32, %arg1: i32) -> (i32, i32) {
    %c0_i32 = arith.constant 0 : i32
    %c0_i32_0 = arith.constant 0 : i32
    return %arg0, %c0_i32 : i32, i32
  }
  func.func @transform_8(%arg0: i32, %arg1: i32) -> (i32, i32) {
    %c0_i32 = arith.constant 0 : i32
    %c0_i32_0 = arith.constant 0 : i32
    return %arg0, %c0_i32 : i32, i32
  }
  func.func @transform_9(%arg0: i32, %arg1: i32) -> (i32, i32) {
    %c0_i32 = arith.constant 0 : i32
    %c0_i32_0 = arith.constant 0 : i32
    return %arg0, %c0_i32 : i32, i32
  }
}

</mosaic_0001>

<bundles_post_ra>
// kernel: tpu_custom_call.1
= control target key start
LH: loop header
LB: loop body
LE: loop exit
PB: predicated region body
PF: predicated region fallthrough
CT: control target
= control target key end

     0   :  { %15 = vsyncpa [#allocation4], 0  ;;  %s2906_s0 = inlined_call_operand.vmem [shape: bf16[128,256], index: 0, kind: input, shape index: {}]   ;;  %s2907_s1 = inlined_call_operand.hbm [shape: bf16[256,128], index: 1, kind: input, shape index: {}]   ;;  %s2908_s2 = inlined_call_operand.vmem [shape: f32[1,128], index: 2, kind: input, shape index: {}]   ;;  %s2909_s3 = inlined_call_operand.hbm [shape: bf16[128,128], index: 3, kind: input, shape index: {}]   ;;  %s2910_s4 = inlined_call_operand.vmem [shape: f32[1,128], index: 4, kind: input, shape index: {}]   ;;  %s2911_s5 = inlined_call_operand.hbm [shape: bf16[128,128], index: 5, kind: input, shape index: {}]   ;;  %s2912_s6 = inlined_call_operand.vmem [shape: f32[1,128], index: 6, kind: input, shape index: {}]   ;;  %s2913_s7 = inlined_call_operand.vmem [shape: f32[128,4], index: 7, kind: input, shape index: {}]   ;;  %s2914_s8 = inlined_call_operand.hbm [shape: f32[128,128], index: 8, kind: output, shape index: {0}]   ;;  %s2915_s9 = inlined_call_operand.vmem [shape: f32[128,4], index: 9, kind: output, shape index: {1}]  }
   0x1   :  { %16 = vsyncpa [#allocation7], 0 }
   0x2   :  { %17 = vsyncpa [#allocation5], 0  ;;  %s39_s11 = sshll.u32 %s2909_s3, 4  ;;  %s2025_s12 = smov [#allocation6]   ;;  %s40_s11 = int_to_ptr.hbm [resolvable:$true] %s39_s11 }
   0x3   :  { %s41_s13 = sshll.u32 %s2025_s12, 4  ;;  %s24_s16 = sshll.u32 %s2907_s1, 4  ;;  %s42_s13 = int_to_ptr.vmem [resolvable:$true] %s41_s13  ;;  %s25_s16 = int_to_ptr.hbm [resolvable:$true] %s24_s16 }
   0x4   :  { %s2026_s17 = smov 64   ;;  %s2027_s18 = smov 4  }
   0x5   :  { %47 = dma.hbm_to_vmem [thread:$0]  %s40_s11, 1024, %s42_s13, [#allocation7], %s2026_s17, %s2026_s17, %s2027_s18  }
   0x6   :  { %s2028_s19 = smov [#allocation3]   ;;  %s54_s23 = sshll.u32 %s2911_s5, 4  ;;  %s55_s23 = int_to_ptr.hbm [resolvable:$true] %s54_s23 }
   0x7   :  { %s26_s20 = sshll.u32 %s2028_s19, 4  ;;  %s2029_s3 = smov [#allocation8]   ;;  %s27_s20 = int_to_ptr.vmem [resolvable:$true] %s26_s20 }
   0x8   :  { %32 = dma.hbm_to_vmem [thread:$0]  %s25_s16, 2048, %s27_s20, [#allocation4], %s2026_s17, %s2026_s17, %s2027_s18  }
   0x9   :  { %s56_s24 = sshll.u32 %s2029_s3, 4  ;;  %s57_s24 = int_to_ptr.vmem [resolvable:$true] %s56_s24 }
   0xa   :  { %62 = dma.hbm_to_vmem [thread:$0]  %s55_s23, 1024, %s57_s24, [#allocation7], %s2026_s17, %s2026_s17, %s2027_s18  }
   0xb   :  { %2019 = dma.done.wait [#allocation4], 2048  }
   0xc   :  { %2020 = vsyncadd [#allocation4], 4294965248 }
   0xd   :  { %2021 = dma.done.wait [#allocation7], 2048  }
   0xe   :  { %2022 = vsyncadd [#allocation7], 4294965248  ;;  %v1846_v0 = vld [vmem:[#allocation3 + $0x38] sm:$0xff]  ;;  %v1845_v2 = vld [vmem:[#allocation3 + $0x30] sm:$0xff]  ;;  %s2030_s12 = smov 2   ;;  %s2035_s11 = smov [#allocation9]  }
   0xf   :  { %v1854_v1 = vld [vmem:[#allocation3 + $0x78] sm:$0xff]  ;;  %339 = vmatpush.bf16.msra.mxu0 %v1846_v0  ;;  %v1853_v3 = vld [vmem:[#allocation3 + $0x70] sm:$0xff]  ;;  %v1844_v4 = vld [vmem:[#allocation3 + $0x28] sm:$0xff]  ;;  %s1611_s13 = sshll.u32 %s2035_s11, 4  ;;  %s1613_s16 = sshll.u32 %s2914_s8, 4  ;;  %vm1556_vm2 = vcmask 15360   ;;  %s1612_s13 = int_to_ptr.vmem [resolvable:$true] %s1611_s13  ;;  %s1614_s16 = int_to_ptr.hbm [resolvable:$true] %s1613_s16 }
  0x10   :  { %388 = vmatpush.bf16.msra.mxu1 %v1854_v1  ;;  %v1852_v5 = vld [vmem:[#allocation3 + $0x68] sm:$0xff]  ;;  %v1843_v6 = vld [vmem:[#allocation3 + $0x20] sm:$0xff]  ;;  %v1842_v8 = vld [vmem:[#allocation3 + $0x18] sm:$0xff]  ;;  %s2037_s17 = smov 8   ;;  %vm1573_vm3 = vcmask 23552   ;;  %vm1590_vm4 = vcmask 31744  }
  0x11   :  { %v1851_v7 = vld [vmem:[#allocation3 + $0x60] sm:$0xff]  ;;  %v1850_v9 = vld [vmem:[#allocation3 + $0x58] sm:$0xff]  ;;  %v1841_v10 = vld [vmem:[#allocation3 + $0x10] sm:$0xff] }
  0x12   :  { %v1849_v11 = vld [vmem:[#allocation3 + $0x50] sm:$0xff]  ;;  %v1840_v12 = vld [vmem:[#allocation3 + $0x8] sm:$0xff]  ;;  %v1839_v14 = vld [vmem:[#allocation3] sm:$0xff] }
  0x13   :  { %340 = vmatpush.bf16.msra.mxu0 %v1845_v2  ;;  %v1848_v13 = vld [vmem:[#allocation3 + $0x48] sm:$0xff]  ;;  %v1847_v15 = vld [vmem:[#allocation3 + $0x40] sm:$0xff]  ;;  %v2115_v22 = vld [vmem:[%s2913_s7 + $0x10] sm:$0xff] }
  0x14   :  { %389 = vmatpush.bf16.msra.mxu1 %v1853_v3  ;;  %v1633_v16 = vld [vmem:[%s2906_s0] sm:$0xf]  ;;  %v1824_v17 = vld [vmem:[%s2906_s0 + $0x4] sm:$0xf0]  ;;  %v1823_v18 = vld [vmem:[%s2906_s0 + $0x4] sm:$0xf]  ;;  %842 = vrot.lane.b32.xlu1 %v2115_v22, %s2030_s12 }
  0x15   :  { %v1635_v19 = vld [vmem:[%s2906_s0 + $0x8] sm:$0xf0]  ;;  %v1634_v20 = vor.u32 %v1824_v17, %v1633_v16  ;;  %v1641_v23 = vld [vmem:[%s2906_s0 + $0x10] sm:$0xf]  ;;  %v1826_v24 = vld [vmem:[%s2906_s0 + $0x14] sm:$0xf0] }
  0x16   :  { %v1638_v21 = vor.u32 %v1823_v18, %v1635_v19  ;;  %v1825_v25 = vld [vmem:[%s2906_s0 + $0x14] sm:$0xf]  ;;  %v1643_v26 = vld [vmem:[%s2906_s0 + $0x18] sm:$0xf0]  ;;  %v1642_v27 = vor.u32 %v1826_v24, %v1641_v23  ;;  %v2134_v29 = vld [vmem:[%s2913_s7 + $0x20] sm:$0xff] }
  0x17   :  { %341 = vmatpush.bf16.msra.mxu0 %v1844_v4  ;;  %v1646_v28 = vor.u32 %v1825_v25, %v1643_v26  ;;  %v2139_v30 = vld [vmem:[%s2913_s7] sm:$0xff]  ;;  %846 = vrot.lane.b32.xlu2 %v2134_v29, %s2030_s12  ;;  %v1828_v32 = vld [vmem:[%s2906_s0 + $0x24] sm:$0xf0]  ;;  %v1651_v34 = vld [vmem:[%s2906_s0 + $0x28] sm:$0xf0] }
  0x18   :  { %390 = vmatpush.bf16.msra.mxu1 %v1852_v5  ;;  %838 = vrot.lane.b32.xlu0 %v2139_v30, %s2030_s12  ;;  %v1649_v31 = vld [vmem:[%s2906_s0 + $0x20] sm:$0xf]  ;;  %v1827_v33 = vld [vmem:[%s2906_s0 + $0x24] sm:$0xf]  ;;  %v2160_v37 = vld [vmem:[%s2913_s7 + $0x28] sm:$0xff] }
  0x19   :  { %v1650_v35 = vor.u32 %v1828_v32, %v1649_v31  ;;  %v1654_v36 = vor.u32 %v1827_v33, %v1651_v34  ;;  %v2165_v38 = vld [vmem:[%s2913_s7 + $0x18] sm:$0xff]  ;;  %v2170_v39 = vld [vmem:[%s2913_s7 + $0x8] sm:$0xff]  ;;  %v2181_v40 = vld [vmem:[%s2913_s7 + $0x40] sm:$0xff] }
  0x1a   :  { %v2186_v41 = vld [vmem:[%s2913_s7 + $0x30] sm:$0xff]  ;;  %v1830_v43 = vld [vmem:[%s2906_s0 + $0x34] sm:$0xf0]  ;;  %v1659_v45 = vld [vmem:[%s2906_s0 + $0x38] sm:$0xf0] }
  0x1b   :  { %342 = vmatpush.bf16.msra.mxu0 %v1843_v6  ;;  %v1657_v42 = vld [vmem:[%s2906_s0 + $0x30] sm:$0xf]  ;;  %v1829_v44 = vld [vmem:[%s2906_s0 + $0x34] sm:$0xf]  ;;  %v2207_v48 = vld [vmem:[%s2913_s7 + $0x58] sm:$0xff] }
  0x1c   :  { %391 = vmatpush.bf16.msra.mxu1 %v1851_v7  ;;  %844 = vrot.lane.b32.xlu1 %v2165_v38, %s2030_s12  ;;  %v1658_v46 = vor.u32 %v1830_v43, %v1657_v42  ;;  %v1662_v47 = vor.u32 %v1829_v44, %v1659_v45  ;;  %v2212_v49 = vld [vmem:[%s2913_s7 + $0x48] sm:$0xff]  ;;  %v2217_v50 = vld [vmem:[%s2913_s7 + $0x38] sm:$0xff]  ;;  %v2228_v51 = vld [vmem:[%s2913_s7 + $0x70] sm:$0xff] }
  0x1d   :  { %v2233_v52 = vld [vmem:[%s2913_s7 + $0x60] sm:$0xff]  ;;  %v1832_v54 = vld [vmem:[%s2906_s0 + $0x44] sm:$0xf0]  ;;  %v1667_v56 = vld [vmem:[%s2906_s0 + $0x48] sm:$0xf0] }
  0x1e   :  { %v1665_v53 = vld [vmem:[%s2906_s0 + $0x40] sm:$0xf]  ;;  %v1831_v55 = vld [vmem:[%s2906_s0 + $0x44] sm:$0xf]  ;;  %v2254_v59 = vld [vmem:[%s2913_s7 + $0x50] sm:$0xff] }
  0x1f   :  { %343 = vmatpush.bf16.msra.mxu0 %v1842_v8  ;;  %848 = vrot.lane.b32.xlu2 %v2160_v37, %s2030_s12  ;;  %v1666_v57 = vor.u32 %v1832_v54, %v1665_v53  ;;  %v1670_v58 = vor.u32 %v1831_v55, %v1667_v56  ;;  %v2259_v60 = vld [vmem:[%s2913_s7 + $0x78] sm:$0xff]  ;;  %v2268_v62 = vld [vmem:[%s2913_s7 + $0x68] sm:$0xff]  ;;  %v1673_v63 = vld [vmem:[%s2906_s0 + $0x50] sm:$0xf]  ;;  %s2036_s7 = smov 128  }
  0x20   :  { %392 = vmatpush.bf16.msra.mxu1 %v1850_v9  ;;  %840 = vrot.lane.b32.xlu0 %v2170_v39, %s2030_s12  ;;  %v1862_v61 = vld [vmem:[#allocation6 + $0x38] sm:$0xff]  ;;  %v1833_v1 = vld [vmem:[%s2906_s0 + $0x54] sm:$0xf]  ;;  %v1860_v6 = vld [vmem:[#allocation6 + $0x28] sm:$0xff] }
  0x21   :  { %600 = vmatpush.bf16.msra.mxu2 %v1862_v61  ;;  %v1834_v0 = vld [vmem:[%s2906_s0 + $0x54] sm:$0xf0]  ;;  %v1675_v2 = vld [vmem:[%s2906_s0 + $0x58] sm:$0xf0]  ;;  %v1861_v5 = vld [vmem:[#allocation6 + $0x30] sm:$0xff] }
  0x22   :  { %v1674_v3 = vor.u32 %v1834_v0, %v1673_v63  ;;  %v1678_v4 = vor.u32 %v1833_v1, %v1675_v2  ;;  %v1859_v7 = vld [vmem:[#allocation6 + $0x20] sm:$0xff]  ;;  %v1836_v9 = vld [vmem:[%s2906_s0 + $0x64] sm:$0xf0]  ;;  %v1689_v17 = vld [vmem:[%s2906_s0 + $0x70] sm:$0xf] }
  0x23   :  { %344 = vmatpush.bf16.msra.mxu0 %v1841_v10  ;;  %v1681_v8 = vld [vmem:[%s2906_s0 + $0x60] sm:$0xf]  ;;  %v1835_v10 = vld [vmem:[%s2906_s0 + $0x64] sm:$0xf]  ;;  %v1856_v16 = vld [vmem:[#allocation6 + $0x8] sm:$0xff] }
  0x24   :  { %393 = vmatpush.bf16.msra.mxu1 %v1849_v11  ;;  %852 = vrot.lane.b32.xlu1 %v2217_v50, %s2030_s12  ;;  %v1683_v11 = vld [vmem:[%s2906_s0 + $0x68] sm:$0xf0]  ;;  %v1838_v18 = vld [vmem:[%s2906_s0 + $0x74] sm:$0xf0]  ;;  %v1837_v19 = vld [vmem:[%s2906_s0 + $0x74] sm:$0xf] }
  0x25   :  { %601 = vmatpush.bf16.msra.mxu2 %v1861_v5  ;;  %v1690_v23 = vor.u32 %v1838_v18, %v1689_v17 }
  0x27   :  { %345 = vmatpush.bf16.msra.mxu0 %v1840_v12  ;;  %854 = vrot.lane.b32.xlu2 %v2181_v40, %s2030_s12  ;;  %v1682_v12 = vor.u32 %v1836_v9, %v1681_v8 }
  0x28   :  { %394 = vmatpush.bf16.msra.mxu1 %v1848_v13  ;;  %850 = vrot.lane.b32.xlu0 %v2186_v41, %s2030_s12  ;;  %v1686_v13 = vor.u32 %v1835_v10, %v1683_v11 }
  0x29   :  { %602 = vmatpush.bf16.msra.mxu2 %v1860_v6 }
  0x2b   :  { %346 = vmatpush.bf16.msra.mxu0 %v1839_v14  ;;  %v1858_v14 = vld [vmem:[#allocation6 + $0x18] sm:$0xff] }
  0x2c   :  { %395 = vmatpush.bf16.msra.mxu1 %v1847_v15  ;;  %858 = vrot.lane.b32.xlu1 %v2254_v59, %s2030_s12  ;;  %v1857_v15 = vld [vmem:[#allocation6 + $0x10] sm:$0xff] }
  0x2d   :  { %603 = vmatpush.bf16.msra.mxu2 %v1859_v7 }
  0x2e   :  { %347 = vmatmul.bf16.vlgmr.msra.gmra.mxu0 %v1634_v20  ;;  %v1691_v20 = vld [vmem:[%s2906_s0 + $0x78] sm:$0xf0] }
  0x2f   :  { %396 = vmatmul.bf16.vlgmr.msra.gmra.mxu1 %v1638_v21  ;;  %860 = vrot.lane.b32.xlu2 %v2207_v48, %s2030_s12  ;;  %v1855_v21 = vld [vmem:[#allocation6] sm:$0xff]  ;;  %v1694_v24 = vor.u32 %v1837_v19, %v1691_v20 }
  0x30   :  { %856 = vrot.lane.b32.xlu0 %v2212_v49, %s2030_s12 }
  0x31   :  { %604 = vmatpush.bf16.msra.mxu2 %v1858_v14 }
  0x34   :  { %864 = vrot.lane.b32.xlu1 %v2268_v62, %s2030_s12 }
  0x35   :  { %605 = vmatpush.bf16.msra.mxu2 %v1857_v15 }
  0x37   :  { %866 = vrot.lane.b32.xlu2 %v2228_v51, %s2030_s12 }
  0x38   :  { %862 = vrot.lane.b32.xlu0 %v2233_v52, %s2030_s12 }
  0x39   :  { %606 = vmatpush.bf16.msra.mxu2 %v1856_v16 }
  0x3d   :  { %607 = vmatpush.bf16.msra.mxu2 %v1855_v21 }
  0x3e   :  { %352 = vmatmul.bf16.gmra.mxu0 %v1642_v27 }
  0x3f   :  { %401 = vmatmul.bf16.gmra.mxu1 %v1646_v28 }
  0x40   :  { %868 = vrot.lane.b32.xlu0 %v2259_v60, %s2030_s12 }
  0x4e   :  { %357 = vmatmul.bf16.gmra.mxu0 %v1650_v35  ;;  %v2319_v35 = vld [vmem:[%s2908_s2] ss:$0 sm:$0xff]  ;;  %s2031_s2 = smov 126  }
  0x4f   :  { %406 = vmatmul.bf16.gmra.mxu1 %v1654_v36 }
  0x5e   :  { %362 = vmatmul.bf16.gmra.mxu0 %v1658_v46 }
  0x5f   :  { %411 = vmatmul.bf16.gmra.mxu1 %v1662_v47 }
  0x6e   :  { %367 = vmatmul.bf16.gmra.mxu0 %v1666_v57 }
  0x6f   :  { %416 = vmatmul.bf16.gmra.mxu1 %v1670_v58 }
  0x71   :  { %v847_v25 = vpop.permute.xlu2 %846 }
  0x72   :  { %v2358_v18 = vsub.f32 %v2134_v29, %v847_v25 }
  0x79   :  { %v849_v32 = vpop.permute.xlu2 %848 }
  0x7a   :  { %v2314_v33 = vsub.f32 %v2160_v37, %v849_v32 }
  0x7e   :  { %372 = vmatmul.bf16.gmra.mxu0 %v1674_v3 }
  0x7f   :  { %421 = vmatmul.bf16.gmra.mxu1 %v1678_v4 }
  0x81   :  { %v855_v45 = vpop.permute.xlu2 %854 }
  0x82   :  { %v2326_v47 = vsub.f32 %v2181_v40, %v855_v45 }
  0x86   :  { %v843_v26 = vpop.permute.xlu1 %842 }
  0x87   :  { %v2309_v27 = vsub.f32 %v2115_v22, %v843_v26 }
  0x89   :  { %1080 = vrot.lane.b32.xlu1 %v2309_v27, %s2030_s12  ;;  %v861_v58 = vpop.permute.xlu2 %860 }
  0x8a   :  { %v839_v61 = vpop.permute.xlu0 %838  ;;  %v2331_v63 = vsub.f32 %v2207_v48, %v861_v58 }
  0x8b   :  { %v2334_v0 = vsub.f32 %v2139_v30, %v839_v61 }
  0x8d   :  { %1076 = vrot.lane.b32.xlu2 %v2334_v0, %s2030_s12  ;;  %v902_v20 = vmul.f32 0.5, %v2334_v0 }
  0x8e   :  { %377 = vmatmul.bf16.gmra.mxu0 %v1682_v12  ;;  %v845_v7 = vpop.permute.xlu1 %844 }
  0x8f   :  { %426 = vmatmul.bf16.gmra.mxu1 %v1686_v13  ;;  %v2346_v10 = vsub.f32 %v2165_v38, %v845_v7 }
  0x91   :  { %1086 = vrot.lane.b32.xlu1 %v2314_v33, %s2030_s12  ;;  %v867_v6 = vpop.permute.xlu2 %866 }
  0x92   :  { %v2343_v9 = vsub.f32 %v2228_v51, %v867_v6  ;;  %v841_v11 = vpop.permute.xlu0 %840  ;;  %v905_v6 = vmul.f32 0.5, %v2346_v10 }
  0x93   :  { %v2349_v14 = vsub.f32 %v2170_v39, %v841_v11 }
  0x95   :  { %1082 = vrot.lane.b32.xlu2 %v2346_v10, %s2030_s12  ;;  %1078 = vrot.lane.b32.xlu0 %v2349_v14, %s2030_s12 }
  0x99   :  { %1092 = vrot.lane.b32.xlu1 %v2326_v47, %s2030_s12 }
  0x9a   :  { %v851_v19 = vpop.permute.xlu0 %850 }
  0x9b   :  { %v2362_v21 = vsub.f32 %v2186_v41, %v851_v19  ;;  %v903_v19 = vmul.f32 0.5, %v2349_v14 }
  0x9d   :  { %1088 = vrot.lane.b32.xlu2 %v2362_v21, %s2030_s12  ;;  %1084 = vrot.lane.b32.xlu0 %v2358_v18, %s2030_s12 }
  0x9e   :  { %382 = vmatmul.bf16.gmra.mxu0 %v1690_v23 }
  0x9f   :  { %431 = vmatmul.bf16.gmra.mxu1 %v1694_v24 }
  0xa1   :  { %1098 = vrot.lane.b32.xlu1 %v2331_v63, %s2030_s12 }
  0xa2   :  { %v857_v32 = vpop.permute.xlu0 %856 }
  0xa9   :  { %1104 = vrot.lane.b32.xlu1 %v2343_v9, %s2030_s12 }
  0xab   :  { %v348_v28 = vpop.f32.mrf.mxu0 }
  0xac   :  { %v397_v31 = vpop.f32.mrf.mxu1 }
  0xad   :  { %v398_v34 = vadd.f32 %v397_v31, %v348_v28 }
  0xaf   :  { %v492_v43 = vadd.f32 %v2319_v35, %v398_v34  ;;  %v2372_v34 = vsub.f32 %v2212_v49, %v857_v32  ;;  %v906_v32 = vmul.f32 0.5, %v2358_v18 }
  0xb1   :  { %v508_v53 = vmax.f32 %v492_v43, 0.0  ;;  %934 = vrot.lane.b32.xlu1 %v902_v20, %s2031_s2  ;;  %v853_v43 = vpop.permute.xlu1 %852  ;;  %1094 = vrot.lane.b32.xlu2 %v2372_v34, %s2030_s12 }
  0xb3   :  { %v350_v36 = vpop.f32.mrf.mxu0 }
  0xb4   :  { %v399_v42 = vpop.f32.mrf.mxu1 }
  0xb5   :  { %v400_v44 = vadd.f32 %v399_v42, %v350_v36 }
  0xb7   :  { %v493_v46 = vadd.f32 %v2319_v35, %v400_v44  ;;  %v2377_v44 = vsub.f32 %v2217_v50, %v853_v43 }
  0xb9   :  { %v509_v54 = vmax.f32 %v493_v46, 0.0  ;;  %1090 = vrot.lane.b32.xlu0 %v2377_v44, %s2030_s12  ;;  %940 = vrot.lane.b32.xlu1 %v905_v6, %s2031_s2 }
  0xbb   :  { %v524_v55 = vpack.c.bf16 %v509_v54, %v508_v53  ;;  %v353_v56 = vpop.f32.mrf.mxu0  ;;  %v863_v54 = vpop.permute.xlu0 %862 }
  0xbc   :  { %v402_v57 = vpop.f32.mrf.mxu1 }
  0xbd   :  { %608 = vmatmul.bf16.vlgmr.msra.gmra.mxu2 %v524_v55  ;;  %v403_v1 = vadd.f32 %v402_v57, %v353_v56  ;;  %v2382_v55 = vsub.f32 %v2233_v52, %v863_v54  ;;  %v859_v57 = vpop.permute.xlu1 %858  ;;  %v908_v54 = vmul.f32 0.5, %v2362_v21 }
  0xbe   :  { %v2387_v58 = vsub.f32 %v2254_v59, %v859_v57 }
  0xbf   :  { %v494_v4 = vadd.f32 %v2319_v35, %v403_v1  ;;  %1100 = vrot.lane.b32.xlu2 %v2382_v55, %s2030_s12 }
  0xc1   :  { %v510_v12 = vmax.f32 %v494_v4, 0.0  ;;  %1096 = vrot.lane.b32.xlu0 %v2387_v58, %s2030_s12  ;;  %946 = vrot.lane.b32.xlu1 %v908_v54, %s2031_s2 }
  0xc3   :  { %v355_v2 = vpop.f32.mrf.mxu0 }
  0xc4   :  { %v404_v3 = vpop.f32.mrf.mxu1 }
  0xc5   :  { %v405_v5 = vadd.f32 %v404_v3, %v355_v2 }
  0xc7   :  { %v495_v8 = vadd.f32 %v2319_v35, %v405_v5  ;;  %v869_v5 = vpop.permute.xlu0 %868 }
  0xc8   :  { %v2395_v7 = vsub.f32 %v2259_v60, %v869_v5 }
  0xc9   :  { %v511_v13 = vmax.f32 %v495_v8, 0.0 }
  0xca   :  { %1106 = vrot.lane.b32.xlu2 %v2395_v7, %s2030_s12 }
  0xcb   :  { %v525_v15 = vpack.c.bf16 %v511_v13, %v510_v12  ;;  %v358_v16 = vpop.f32.mrf.mxu0  ;;  %v865_v12 = vpop.permute.xlu1 %864 }
  0xcc   :  { %v407_v17 = vpop.f32.mrf.mxu1 }
  0xcd   :  { %613 = vmatmul.bf16.gmra.mxu2 %v525_v15  ;;  %v408_v23 = vadd.f32 %v407_v17, %v358_v16  ;;  %v2401_v15 = vsub.f32 %v2268_v62, %v865_v12 }
  0xcf   :  { %v496_v25 = vadd.f32 %v2319_v35, %v408_v23  ;;  %1102 = vrot.lane.b32.xlu0 %v2401_v15, %s2030_s12 }
  0xd1   :  { %v512_v36 = vmax.f32 %v496_v25, 0.0 }
  0xd2   :  { %936 = vrot.lane.b32.xlu2 %v903_v19, %s2031_s2  ;;  %v913_v19 = vmul.f32 0.5, %v2331_v63 }
  0xd3   :  { %v360_v24 = vpop.f32.mrf.mxu0 }
  0xd4   :  { %v409_v26 = vpop.f32.mrf.mxu1 }
  0xd5   :  { %v410_v28 = vadd.f32 %v409_v26, %v360_v24  ;;  %v904_v26 = vmul.f32 0.5, %v2309_v27 }
  0xd7   :  { %v497_v31 = vadd.f32 %v2319_v35, %v410_v28  ;;  %938 = vrot.lane.b32.xlu0 %v904_v26, %s2031_s2  ;;  %v1869_v26 = vld [vmem:[#allocation8 + $0x30] sm:$0xff] }
  0xd9   :  { %v513_v42 = vmax.f32 %v497_v31, 0.0 }
  0xda   :  { %942 = vrot.lane.b32.xlu2 %v906_v32, %s2031_s2  ;;  %v1868_v32 = vld [vmem:[#allocation8 + $0x28] sm:$0xff] }
  0xdb   :  { %v526_v45 = vpack.c.bf16 %v513_v42, %v512_v36  ;;  %v363_v46 = vpop.f32.mrf.mxu0 }
  0xdc   :  { %v412_v53 = vpop.f32.mrf.mxu1 }
  0xdd   :  { %618 = vmatmul.bf16.gmra.mxu2 %v526_v45  ;;  %v413_v56 = vadd.f32 %v412_v53, %v363_v46  ;;  %v907_v53 = vmul.f32 0.5, %v2314_v33 }
  0xdf   :  { %v498_v2 = vadd.f32 %v2319_v35, %v413_v56  ;;  %944 = vrot.lane.b32.xlu0 %v907_v53, %s2031_s2  ;;  %v909_v56 = vmul.f32 0.5, %v2377_v44  ;;  %v1867_v53 = vld [vmem:[#allocation8 + $0x20] sm:$0xff] }
  0xe1   :  { %v514_v8 = vmax.f32 %v498_v2, 0.0  ;;  %v910_v2 = vmul.f32 0.5, %v2326_v47 }
  0xe2   :  { %948 = vrot.lane.b32.xlu2 %v909_v56, %s2031_s2 }
  0xe3   :  { %v365_v61 = vpop.f32.mrf.mxu0 }
  0xe4   :  { %v414_v1 = vpop.f32.mrf.mxu1 }
  0xe5   :  { %v415_v3 = vadd.f32 %v414_v1, %v365_v61 }
  0xe7   :  { %v499_v4 = vadd.f32 %v2319_v35, %v415_v3  ;;  %v911_v3 = vmul.f32 0.5, %v2372_v34  ;;  %950 = vrot.lane.b32.xlu0 %v910_v2, %s2031_s2 }
  0xe9   :  { %v515_v11 = vmax.f32 %v499_v4, 0.0  ;;  %952 = vrot.lane.b32.xlu1 %v911_v3, %s2031_s2 }
  0xeb   :  { %v527_v13 = vpack.c.bf16 %v515_v11, %v514_v8  ;;  %v368_v16 = vpop.f32.mrf.mxu0  ;;  %v912_v8 = vmul.f32 0.5, %v2387_v58 }
  0xec   :  { %v417_v17 = vpop.f32.mrf.mxu1 }
  0xed   :  { %623 = vmatmul.bf16.gmra.mxu2 %v527_v13  ;;  %v418_v20 = vadd.f32 %v417_v17, %v368_v16  ;;  %954 = vrot.lane.b32.xlu2 %v912_v8, %s2031_s2 }
  0xef   :  { %v500_v25 = vadd.f32 %v2319_v35, %v418_v20  ;;  %v914_v20 = vmul.f32 0.5, %v2382_v55  ;;  %956 = vrot.lane.b32.xlu0 %v913_v19, %s2031_s2  ;;  %v1863_v19 = vld [vmem:[#allocation8] sm:$0xff] }
  0xf1   :  { %v516_v36 = vmax.f32 %v500_v25, 0.0  ;;  %958 = vrot.lane.b32.xlu1 %v914_v20, %s2031_s2 }
  0xf3   :  { %v370_v23 = vpop.f32.mrf.mxu0 }
  0xf4   :  { %v419_v24 = vpop.f32.mrf.mxu1 }
  0xf5   :  { %v420_v28 = vadd.f32 %v419_v24, %v370_v23  ;;  %v1870_v23 = vld [vmem:[#allocation8 + $0x38] sm:$0xff]  ;;  %v915_v24 = vmul.f32 0.5, %v2401_v15 }
  0xf6   :  { %741 = vmatpush.bf16.msra.mxu3 %v1870_v23 }
  0xf7   :  { %v501_v31 = vadd.f32 %v2319_v35, %v420_v28  ;;  %960 = vrot.lane.b32.xlu2 %v915_v24, %s2031_s2  ;;  %v916_v28 = vmul.f32 0.5, %v2343_v9 }
  0xf9   :  { %v517_v42 = vmax.f32 %v501_v31, 0.0  ;;  %v917_v31 = vmul.f32 0.5, %v2395_v7  ;;  %962 = vrot.lane.b32.xlu0 %v916_v28, %s2031_s2 }
  0xfa   :  { %742 = vmatpush.bf16.msra.mxu3 %v1869_v26 }
  0xfb   :  { %v528_v43 = vpack.c.bf16 %v517_v42, %v516_v36  ;;  %v373_v45 = vpop.f32.mrf.mxu0  ;;  %964 = vrot.lane.b32.xlu1 %v917_v31, %s2031_s2 }
  0xfc   :  { %v422_v46 = vpop.f32.mrf.mxu1 }
  0xfd   :  { %628 = vmatmul.bf16.gmra.mxu2 %v528_v43  ;;  %v423_v57 = vadd.f32 %v422_v46, %v373_v45 }
  0xfe   :  { %743 = vmatpush.bf16.msra.mxu3 %v1868_v32 }
  0xff   :  { %v502_v4 = vadd.f32 %v2319_v35, %v423_v57  ;;  %1254 = vrot.lane.b32.xlu2 %v2349_v14, %s2027_s18  ;;  %v1865_v14 = vld [vmem:[#allocation8 + $0x10] sm:$0xff] }
 0x101   :  { %v518_v11 = vmax.f32 %v502_v4, 0.0  ;;  %1256 = vrot.lane.b32.xlu0 %v2309_v27, %s2027_s18  ;;  %v1866_v4 = vld [vmem:[#allocation8 + $0x18] sm:$0xff] }
 0x102   :  { %744 = vmatpush.bf16.msra.mxu3 %v1867_v53 }
 0x103   :  { %v375_v61 = vpop.f32.mrf.mxu0  ;;  %1252 = vrot.lane.b32.xlu1 %v2334_v0, %s2027_s18  ;;  %v1864_v0 = vld [vmem:[#allocation8 + $0x8] sm:$0xff] }
 0x104   :  { %v424_v1 = vpop.f32.mrf.mxu1 }
 0x105   :  { %v425_v5 = vadd.f32 %v424_v1, %v375_v61  ;;  %v2441_v61 = vpop.permute.xlu1 %1080  ;;  %v2443_v1 = vpop.permute.xlu2 %1076 }
 0x106   :  { %745 = vmatpush.bf16.msra.mxu3 %v1866_v4 }
 0x107   :  { %v503_v6 = vadd.f32 %v2319_v35, %v425_v5  ;;  %1260 = vrot.lane.b32.xlu2 %v2358_v18, %s2027_s18 }
 0x109   :  { %v519_v12 = vmax.f32 %v503_v6, 0.0  ;;  %1262 = vrot.lane.b32.xlu0 %v2314_v33, %s2027_s18 }
 0x10a   :  { %746 = vmatpush.bf16.msra.mxu3 %v1865_v14 }
 0x10b   :  { %v529_v13 = vpack.c.bf16 %v519_v12, %v518_v11  ;;  %v378_v16 = vpop.f32.mrf.mxu0  ;;  %1258 = vrot.lane.b32.xlu1 %v2346_v10, %s2027_s18 }
 0x10c   :  { %v427_v17 = vpop.f32.mrf.mxu1 }
 0x10d   :  { %633 = vmatmul.bf16.gmra.mxu2 %v529_v13  ;;  %v428_v25 = vadd.f32 %v427_v17, %v378_v16  ;;  %v2451_v6 = vpop.permute.xlu1 %1086  ;;  %v2453_v8 = vpop.permute.xlu2 %1082 }
 0x10e   :  { %747 = vmatpush.bf16.msra.mxu3 %v1864_v0 }
 0x10f   :  { %v504_v43 = vadd.f32 %v2319_v35, %v428_v25  ;;  %1266 = vrot.lane.b32.xlu2 %v2377_v44, %s2027_s18 }
 0x111   :  { %v520_v54 = vmax.f32 %v504_v43, 0.0  ;;  %1268 = vrot.lane.b32.xlu0 %v2326_v47, %s2027_s18 }
 0x112   :  { %748 = vmatpush.bf16.msra.mxu3 %v1863_v19 }
 0x113   :  { %v380_v36 = vpop.f32.mrf.mxu0  ;;  %1264 = vrot.lane.b32.xlu1 %v2362_v21, %s2027_s18  ;;  %v2491_v21 = vpop.permute.xlu0 %1078 }
 0x114   :  { %v429_v42 = vpop.f32.mrf.mxu1 }
 0x115   :  { %v430_v45 = vadd.f32 %v429_v42, %v380_v36  ;;  %v2463_v23 = vpop.permute.xlu1 %1092  ;;  %v2465_v24 = vpop.permute.xlu2 %1088 }
 0x117   :  { %v505_v46 = vadd.f32 %v2319_v35, %v430_v45  ;;  %1272 = vrot.lane.b32.xlu2 %v2387_v58, %s2027_s18 }
 0x119   :  { %v521_v56 = vmax.f32 %v505_v46, 0.0  ;;  %1274 = vrot.lane.b32.xlu0 %v2331_v63, %s2027_s18  ;;  %v2496_v63 = vld [vmem:[%s2910_s4] ss:$0 sm:$0xff] }
 0x11b   :  { %v530_v57 = vpack.c.bf16 %v521_v56, %v520_v54  ;;  %v383_v2 = vpop.f32.mrf.mxu0  ;;  %1270 = vrot.lane.b32.xlu1 %v2372_v34, %s2027_s18 }
 0x11c   :  { %v432_v3 = vpop.f32.mrf.mxu1 }
 0x11d   :  { %638 = vmatmul.bf16.gmra.mxu2 %v530_v57  ;;  %v433_v5 = vadd.f32 %v432_v3, %v383_v2  ;;  %v2473_v33 = vpop.permute.xlu1 %1098 }
 0x11f   :  { %v506_v13 = vadd.f32 %v2319_v35, %v433_v5  ;;  %1278 = vrot.lane.b32.xlu2 %v2401_v15, %s2027_s18 }
 0x121   :  { %v522_v16 = vmax.f32 %v506_v13, 0.0  ;;  %1280 = vrot.lane.b32.xlu0 %v2343_v9, %s2027_s18 }
 0x123   :  { %v385_v11 = vpop.f32.mrf.mxu0  ;;  %1276 = vrot.lane.b32.xlu1 %v2382_v55, %s2027_s18  ;;  %v2505_v55 = vpop.permute.xlu0 %1084 }
 0x124   :  { %v434_v12 = vpop.f32.mrf.mxu1 }
 0x125   :  { %v435_v27 = vadd.f32 %v434_v12, %v385_v11  ;;  %v2483_v47 = vpop.permute.xlu1 %1104 }
 0x127   :  { %v507_v18 = vadd.f32 %v2319_v35, %v435_v27  ;;  %v2475_v35 = vpop.permute.xlu2 %1094 }
 0x129   :  { %v523_v17 = vmax.f32 %v507_v18, 0.0 }
 0x12b   :  { %v531_v20 = vpack.c.bf16 %v523_v17, %v522_v16  ;;  %1282 = vrot.lane.b32.xlu1 %v2395_v7, %s2027_s18  ;;  %v2510_v42 = vpop.permute.xlu0 %1090 }
 0x12d   :  { %643 = vmatmul.bf16.gmra.mxu2 %v531_v20  ;;  %v935_v34 = vpop.permute.xlu1 %934 }
 0x12e   :  { %v982_v58 = vadd.f32 %v935_v34, %v2139_v30 }
 0x12f   :  { %v2485_v10 = vpop.permute.xlu2 %1100 }
 0x130   :  { %1156 = vrot.lane.b32.xlu0 %v982_v58, %s2027_s18 }
 0x133   :  { %v2514_v53 = vpop.permute.xlu0 %1096 }
 0x135   :  { %v941_v2 = vpop.permute.xlu1 %940 }
 0x136   :  { %v985_v3 = vadd.f32 %v941_v2, %v2165_v38 }
 0x137   :  { %v2499_v15 = vpop.permute.xlu2 %1106 }
 0x138   :  { %1162 = vrot.lane.b32.xlu0 %v985_v3, %s2027_s18 }
 0x13d   :  { %v947_v34 = vpop.permute.xlu1 %946 }
 0x13e   :  { %v988_v58 = vadd.f32 %v947_v34, %v2186_v41  ;;  %v2032_v34 = vmov 5.0  }
 0x13f   :  { %v937_v32 = vpop.permute.xlu2 %936  ;;  %1887 = vrcp.f32 %v2032_v34 }
 0x140   :  { %v609_v44 = vpop.f32.mrf.mxu2  ;;  %v983_v30 = vadd.f32 %v937_v32, %v2170_v39  ;;  %1168 = vrot.lane.b32.xlu0 %v988_v58, %s2027_s18 }
 0x141   :  { %v610_v9 = vadd.f32 %v2496_v63, %v609_v44 }
 0x142   :  { %1158 = vrot.lane.b32.xlu1 %v983_v30, %s2027_s18 }
 0x143   :  { %v649_v28 = vmax.f32 %v610_v9, 0.0 }
 0x147   :  { %v943_v7 = vpop.permute.xlu2 %942 }
 0x148   :  { %v611_v26 = vpop.f32.mrf.mxu2  ;;  %v986_v45 = vadd.f32 %v943_v7, %v2134_v29  ;;  %v2521_v29 = vpop.permute.xlu0 %1102 }
 0x149   :  { %v612_v25 = vadd.f32 %v2496_v63, %v611_v26 }
 0x14a   :  { %1164 = vrot.lane.b32.xlu1 %v986_v45, %s2027_s18 }
 0x14b   :  { %v650_v31 = vmax.f32 %v612_v25, 0.0 }
 0x14d   :  { %v665_v36 = vpack.c.bf16 %v650_v31, %v649_v28 }
 0x14f   :  { %749 = vmatmul.bf16.vlgmr.msra.gmra.mxu3 %v665_v36  ;;  %v949_v4 = vpop.permute.xlu2 %948 }
 0x150   :  { %v614_v43 = vpop.f32.mrf.mxu2  ;;  %v989_v14 = vadd.f32 %v949_v4, %v2217_v50  ;;  %v939_v0 = vpop.permute.xlu0 %938 }
 0x151   :  { %v615_v46 = vadd.f32 %v2496_v63, %v614_v43  ;;  %v984_v50 = vadd.f32 %v939_v0, %v2115_v22 }
 0x152   :  { %1170 = vrot.lane.b32.xlu1 %v989_v14, %s2027_s18 }
 0x153   :  { %v651_v57 = vmax.f32 %v615_v46, 0.0  ;;  %1160 = vrot.lane.b32.xlu2 %v984_v50, %s2027_s18 }
 0x157   :  { %v955_v12 = vpop.permute.xlu2 %954 }
 0x158   :  { %v616_v54 = vpop.f32.mrf.mxu2  ;;  %v992_v13 = vadd.f32 %v955_v12, %v2254_v59  ;;  %v945_v9 = vpop.permute.xlu0 %944 }
 0x159   :  { %v617_v56 = vadd.f32 %v2496_v63, %v616_v54  ;;  %v987_v26 = vadd.f32 %v945_v9, %v2160_v37 }
 0x15a   :  { %1176 = vrot.lane.b32.xlu1 %v992_v13, %s2027_s18 }
 0x15b   :  { %v652_v39 = vmax.f32 %v617_v56, 0.0  ;;  %1166 = vrot.lane.b32.xlu2 %v987_v26, %s2027_s18  ;;  %v953_v28 = vpop.permute.xlu1 %952 }
 0x15c   :  { %v991_v31 = vadd.f32 %v953_v28, %v2212_v49 }
 0x15d   :  { %v666_v5 = vpack.c.bf16 %v652_v39, %v651_v57 }
 0x15e   :  { %1174 = vrot.lane.b32.xlu0 %v991_v31, %s2027_s18 }
 0x15f   :  { %754 = vmatmul.bf16.gmra.mxu3 %v666_v5  ;;  %v961_v19 = vpop.permute.xlu2 %960 }
 0x160   :  { %v619_v11 = vpop.f32.mrf.mxu2  ;;  %v995_v44 = vadd.f32 %v961_v19, %v2268_v62  ;;  %v951_v32 = vpop.permute.xlu0 %950 }
 0x161   :  { %v620_v27 = vadd.f32 %v2496_v63, %v619_v11  ;;  %v990_v36 = vadd.f32 %v951_v32, %v2181_v40 }
 0x162   :  { %1182 = vrot.lane.b32.xlu1 %v995_v44, %s2027_s18 }
 0x163   :  { %v653_v16 = vmax.f32 %v620_v27, 0.0  ;;  %1172 = vrot.lane.b32.xlu2 %v990_v36, %s2027_s18  ;;  %v959_v7 = vpop.permute.xlu1 %958  ;;  %v2561_v36 = vld [vmem:[%s2912_s6] ss:$0 sm:$0xff]  ;;  %s2034_s6 = smov 124  }
 0x164   :  { %v994_v45 = vadd.f32 %v959_v7, %v2233_v52 }
 0x166   :  { %1180 = vrot.lane.b32.xlu0 %v994_v45, %s2027_s18 }
 0x168   :  { %v621_v38 = vpop.f32.mrf.mxu2  ;;  %v957_v46 = vpop.permute.xlu0 %956 }
 0x169   :  { %v622_v18 = vadd.f32 %v2496_v63, %v621_v38  ;;  %v993_v54 = vadd.f32 %v957_v46, %v2207_v48 }
 0x16b   :  { %v654_v17 = vmax.f32 %v622_v18, 0.0  ;;  %1178 = vrot.lane.b32.xlu2 %v993_v54, %s2027_s18 }
 0x16d   :  { %v667_v20 = vpack.c.bf16 %v654_v17, %v653_v16  ;;  %v965_v56 = vpop.permute.xlu1 %964 }
 0x16e   :  { %v997_v39 = vadd.f32 %v965_v56, %v2259_v60 }
 0x16f   :  { %759 = vmatmul.bf16.gmra.mxu3 %v667_v20 }
 0x170   :  { %v624_v59 = vpop.f32.mrf.mxu2  ;;  %v963_v2 = vpop.permute.xlu0 %962  ;;  %1186 = vrot.lane.b32.xlu0 %v997_v39, %s2027_s18 }
 0x171   :  { %v625_v22 = vadd.f32 %v2496_v63, %v624_v59  ;;  %v996_v3 = vadd.f32 %v963_v2, %v2228_v51 }
 0x173   :  { %v655_v30 = vmax.f32 %v625_v22, 0.0  ;;  %1184 = vrot.lane.b32.xlu2 %v996_v3, %s2027_s18  ;;  %v1888_v22 = vpop.eup %1887 }
 0x174   :  { %vm1026_vm0 = vweird.f32 %v1888_v22 }
 0x178   :  { %v626_v25 = vpop.f32.mrf.mxu2  ;;  %v1257_v7 = vpop.permute.xlu0 %1256 }
 0x179   :  { %v627_v62 = vadd.f32 %v2496_v63, %v626_v25  ;;  %v1022_v25 = vmul.f32 5.0, %v1888_v22 }
 0x17b   :  { %v656_v41 = vmax.f32 %v627_v62, 0.0  ;;  %v1023_v28 = vsub.f32 1.0, %v1022_v25  ;;  %v1255_v62 = vpop.permute.xlu2 %1254 }
 0x17d   :  { %v668_v37 = vpack.c.bf16 %v656_v41, %v655_v30  ;;  %v1024_v31 = vmul.f32 %v1888_v22, %v1023_v28  ;;  %v1253_v30 = vpop.permute.xlu1 %1252 }
 0x17f   :  { %764 = vmatmul.bf16.gmra.mxu3 %v668_v37  ;;  %v1025_v32 = vadd.f32 %v1888_v22, %v1024_v31 }
 0x180   :  { %v629_v43 = vpop.f32.mrf.mxu2  ;;  %v2581_v2 = vpop.permute.xlu0 %1262 }
 0x181   :  { %v630_v40 = vadd.f32 %v2496_v63, %v629_v43  ;;  %v2565_v37 = vsel %vm1026_vm0, %v1888_v22, %v1025_v32 }
 0x183   :  { %v657_v4 = vmax.f32 %v630_v40, 0.0 }
 0x185   :  { %v1259_v56 = vpop.permute.xlu1 %1258 }
 0x188   :  { %v631_v49 = vpop.f32.mrf.mxu2 }
 0x189   :  { %v632_v57 = vadd.f32 %v2496_v63, %v631_v49 }
 0x18b   :  { %v658_v52 = vmax.f32 %v632_v57, 0.0 }
 0x18d   :  { %v669_v48 = vpack.c.bf16 %v658_v52, %v657_v4 }
 0x18f   :  { %769 = vmatmul.bf16.gmra.mxu3 %v669_v48  ;;  %v2033_v48 = vmov 10.0  }
 0x190   :  { %v634_v5 = vpop.f32.mrf.mxu2 }
 0x191   :  { %v635_v14 = vadd.f32 %v2496_v63, %v634_v5 }
 0x193   :  { %v659_v13 = vmax.f32 %v635_v14, 0.0 }
 0x198   :  { %v636_v11 = vpop.f32.mrf.mxu2 }
 0x199   :  { %v637_v12 = vadd.f32 %v2496_v63, %v636_v11 }
 0x19b   :  { %v660_v27 = vmax.f32 %v637_v12, 0.0 }
 0x19d   :  { %v670_v60 = vpack.c.bf16 %v660_v27, %v659_v13  ;;  %v2588_v27 = vpop.permute.xlu1 %1264 }
 0x19f   :  { %774 = vmatmul.bf16.gmra.mxu3 %v670_v60 }
 0x1a0   :  { %v639_v38 = vpop.f32.mrf.mxu2 }
 0x1a1   :  { %v640_v51 = vadd.f32 %v2496_v63, %v639_v38 }
 0x1a3   :  { %v661_v50 = vmax.f32 %v640_v51, 0.0 }
 0x1a8   :  { %v641_v0 = vpop.f32.mrf.mxu2 }
 0x1a9   :  { %v642_v18 = vadd.f32 %v2496_v63, %v641_v0  ;;  %v2594_v0 = vpop.permute.xlu0 %1268 }
 0x1ab   :  { %v662_v16 = vmax.f32 %v642_v18, 0.0 }
 0x1ad   :  { %v671_v17 = vpack.c.bf16 %v662_v16, %v661_v50 }
 0x1af   :  { %779 = vmatmul.bf16.gmra.mxu3 %v671_v17 }
 0x1b0   :  { %v644_v19 = vpop.f32.mrf.mxu2 }
 0x1b1   :  { %v645_v20 = vadd.f32 %v2496_v63, %v644_v19  ;;  %v2607_v28 = vpop.permute.xlu0 %1274 }
 0x1b3   :  { %v663_v58 = vmax.f32 %v645_v20, 0.0 }
 0x1b8   :  { %v646_v44 = vpop.f32.mrf.mxu2 }
 0x1b9   :  { %v647_v59 = vadd.f32 %v2496_v63, %v646_v44  ;;  %v2563_v63 = vpop.permute.xlu2 %1260 }
 0x1bb   :  { %v664_v9 = vmax.f32 %v647_v59, 0.0 }
 0x1bd   :  { %v672_v26 = vpack.c.bf16 %v664_v9, %v663_v58  ;;  %v2605_v58 = vpop.permute.xlu1 %1270 }
 0x1bf   :  { %784 = vmatmul.bf16.gmra.mxu3 %v672_v26 }
 0x1c1   :  { %v2573_v40 = vpop.permute.xlu2 %1266 }
 0x1c9   :  { %v2586_v12 = vpop.permute.xlu2 %1272 }
 0x1d1   :  { %v2602_v34 = vpop.permute.xlu2 %1278 }
 0x1d2   :  { %v750_v41 = vpop.f32.mrf.mxu3 }
 0x1d3   :  { %v2568_v43 = vadd.f32 %v2561_v36, %v750_v41 }
 0x1d5   :  { %790 = vst [vmem:[#allocation9] sm:$0xff] %v2568_v43  ;;  %v1028_v45 = vmul.f32 %v2565_v37, %v2568_v43 }
 0x1d7   :  { %v1044_v46 = vmin.f32 %v1028_v45, 4.1351666 }
 0x1d9   :  { %v1220_v54 = vmul.f32 1.442695, %v1044_v46  ;;  %v2615_v46 = vpop.permute.xlu2 %1160 }
 0x1da   :  { %v752_v49 = vpop.f32.mrf.mxu3 }
 0x1db   :  { %1889 = vpow2.f32 %v1220_v54  ;;  %v2576_v57 = vadd.f32 %v2561_v36, %v752_v49 }
 0x1dc   :  { %1891 = vrcp.f32 %v2033_v48 }
 0x1dd   :  { %791 = vst [vmem:[#allocation9 + $0x8] sm:$0xff] %v2576_v57  ;;  %v1029_v39 = vmul.f32 %v2565_v37, %v2576_v57 }
 0x1df   :  { %v1045_v3 = vmin.f32 %v1029_v39, 4.1351666 }
 0x1e1   :  { %v1890_v4 = vpop.eup %1889  ;;  %v1222_v52 = vmul.f32 1.442695, %v1045_v3  ;;  %v2618_v3 = vpop.permute.xlu1 %1276 }
 0x1e2   :  { %v755_v5 = vpop.f32.mrf.mxu3  ;;  %v1300_v14 = vmul.f32 %v1890_v4, %v1253_v30  ;;  %v1892_v51 = vpop.eup %1891 }
 0x1e3   :  { %1893 = vpow2.f32 %v1222_v52  ;;  %v2584_v11 = vadd.f32 %v2561_v36, %v755_v5  ;;  %v999_v20 = vmul.f32 10.0, %v1892_v51  ;;  %vm1003_vm1 = vweird.f32 %v1892_v51  ;;  %v2621_v5 = vpop.permute.xlu0 %1280 }
 0x1e4   :  { %v1316_v13 = vmul.f32 0.5, %v1300_v14 }
 0x1e5   :  { %792 = vst [vmem:[#allocation9 + $0x10] sm:$0xff] %v2584_v11  ;;  %v1030_v60 = vmul.f32 %v2565_v37, %v2584_v11  ;;  %v1000_v26 = vsub.f32 1.0, %v999_v20 }
 0x1e6   :  { %1348 = vrot.lane.b32.xlu2 %v1316_v13, %s2031_s2 }
 0x1e7   :  { %v1046_v38 = vmin.f32 %v1030_v60, 4.1351666  ;;  %v1001_v30 = vmul.f32 %v1892_v51, %v1000_v26 }
 0x1e9   :  { %v1894_v18 = vpop.eup %1893  ;;  %v1224_v50 = vmul.f32 1.442695, %v1046_v38  ;;  %v1002_v49 = vadd.f32 %v1892_v51, %v1001_v30 }
 0x1ea   :  { %v757_v16 = vpop.f32.mrf.mxu3  ;;  %v1301_v17 = vmul.f32 %v1894_v18, %v1255_v62  ;;  %v1167_v18 = vpop.permute.xlu2 %1166 }
 0x1eb   :  { %1895 = vpow2.f32 %v1224_v50  ;;  %v2597_v19 = vadd.f32 %v2561_v36, %v757_v16  ;;  %v2623_v14 = vsel %vm1003_vm1, %v1892_v51, %v1002_v49 }
 0x1ec   :  { %v1317_v44 = vmul.f32 0.5, %v1301_v17 }
 0x1ed   :  { %793 = vst [vmem:[#allocation9 + $0x18] sm:$0xff] %v2597_v19  ;;  %v1031_v59 = vmul.f32 %v2565_v37, %v2597_v19 }
 0x1ee   :  { %1350 = vrot.lane.b32.xlu0 %v1317_v44, %s2031_s2 }
 0x1ef   :  { %v1047_v9 = vmin.f32 %v1031_v59, 4.1351666  ;;  %v2632_v59 = vpop.permute.xlu1 %1282 }
 0x1f1   :  { %v1896_v22 = vpop.eup %1895  ;;  %v1226_v25 = vmul.f32 1.442695, %v1047_v9 }
 0x1f2   :  { %v760_v62 = vpop.f32.mrf.mxu3  ;;  %v1302_v31 = vmul.f32 %v1896_v22, %v1257_v7 }
 0x1f3   :  { %1897 = vpow2.f32 %v1226_v25  ;;  %v2610_v32 = vadd.f32 %v2561_v36, %v760_v62 }
 0x1f4   :  { %v1318_v41 = vmul.f32 0.5, %v1302_v31 }
 0x1f5   :  { %794 = vst [vmem:[#allocation9 + $0x20] sm:$0xff] %v2610_v32  ;;  %v1032_v45 = vmul.f32 %v2565_v37, %v2610_v32 }
 0x1f6   :  { %1352 = vrot.lane.b32.xlu1 %v1318_v41, %s2031_s2 }
 0x1f7   :  { %v1048_v54 = vmin.f32 %v1032_v45, 4.1351666 }
 0x1f9   :  { %v1898_v39 = vpop.eup %1897  ;;  %v1228_v7 = vmul.f32 1.442695, %v1048_v54  ;;  %v2647_v54 = vpop.permute.xlu1 %1158 }
 0x1fa   :  { %v762_v4 = vpop.f32.mrf.mxu3  ;;  %v1303_v52 = vmul.f32 %v1898_v39, %v1259_v56 }
 0x1fb   :  { %1899 = vpow2.f32 %v1228_v7  ;;  %v763_v48 = vadd.f32 %v2561_v36, %v762_v4 }
 0x1fc   :  { %v1319_v13 = vmul.f32 0.5, %v1303_v52 }
 0x1fd   :  { %795 = vst [vmem:[#allocation9 + $0x28] sm:$0xff] %v763_v48  ;;  %v1033_v60 = vmul.f32 %v2565_v37, %v763_v48  ;;  %v1010_v38 = vmul.f32 %v2623_v14, %v763_v48 }
 0x1fe   :  { %1354 = vrot.lane.b32.xlu2 %v1319_v13, %s2031_s2 }
 0x1ff   :  { %v1049_v50 = vmin.f32 %v1033_v60, 4.1351666  ;;  %v1129_v16 = vmul.f32 %v2451_v6, %v1010_v38  ;;  %v2640_v6 = vpop.permute.xlu0 %1156 }
 0x201   :  { %v1900_v56 = vpop.eup %1899  ;;  %v1230_v17 = vmul.f32 1.442695, %v1049_v50  ;;  %v2629_v20 = vadd.f32 %v1167_v18, %v1129_v16  ;;  %v2657_v38 = vpop.permute.xlu1 %1164 }
 0x202   :  { %v765_v44 = vpop.f32.mrf.mxu3  ;;  %v1304_v51 = vmul.f32 %v1900_v56, %v2563_v63  ;;  %v1173_v56 = vpop.permute.xlu2 %1172 }
 0x203   :  { %1901 = vpow2.f32 %v1230_v17  ;;  %v2635_v9 = vadd.f32 %v2561_v36, %v765_v44 }
 0x204   :  { %v1320_v26 = vmul.f32 0.5, %v1304_v51 }
 0x205   :  { %796 = vst [vmem:[#allocation9 + $0x30] sm:$0xff] %v2635_v9  ;;  %v1034_v22 = vmul.f32 %v2565_v37, %v2635_v9 }
 0x206   :  { %1356 = vrot.lane.b32.xlu0 %v1320_v26, %s2031_s2 }
 0x207   :  { %v1050_v25 = vmin.f32 %v1034_v22, 4.1351666  ;;  %v2652_v39 = vpop.permute.xlu0 %1162 }
 0x209   :  { %v1902_v62 = vpop.eup %1901  ;;  %v1232_v31 = vmul.f32 1.442695, %v1050_v25 }
 0x20a   :  { %v767_v63 = vpop.f32.mrf.mxu3  ;;  %v1305_v30 = vmul.f32 %v1902_v62, %v2581_v2 }
 0x20b   :  { %1903 = vpow2.f32 %v1232_v31  ;;  %v2645_v41 = vadd.f32 %v2561_v36, %v767_v63 }
 0x20c   :  { %v1321_v45 = vmul.f32 0.5, %v1305_v30 }
 0x20d   :  { %797 = vst [vmem:[#allocation9 + $0x38] sm:$0xff] %v2645_v41  ;;  %v1035_v49 = vmul.f32 %v2565_v37, %v2645_v41 }
 0x20e   :  { %1358 = vrot.lane.b32.xlu1 %v1321_v45, %s2031_s2  ;;  %v2671_v45 = vpop.permute.xlu1 %1170 }
 0x20f   :  { %v1051_v7 = vmin.f32 %v1035_v49, 4.1351666  ;;  %v2661_v16 = vpop.permute.xlu0 %1168 }
 0x211   :  { %v1904_v4 = vpop.eup %1903  ;;  %v1234_v52 = vmul.f32 1.442695, %v1051_v7 }
 0x212   :  { %v770_v2 = vpop.f32.mrf.mxu3  ;;  %v1306_v48 = vmul.f32 %v1904_v4, %v2588_v27 }
 0x213   :  { %1905 = vpow2.f32 %v1234_v52  ;;  %v771_v13 = vadd.f32 %v2561_v36, %v770_v2 }
 0x214   :  { %v1322_v60 = vmul.f32 0.5, %v1306_v48 }
 0x215   :  { %798 = vst [vmem:[#allocation9 + $0x40] sm:$0xff] %v771_v13  ;;  %v1036_v18 = vmul.f32 %v2565_v37, %v771_v13  ;;  %v1013_v50 = vmul.f32 %v2623_v14, %v771_v13 }
 0x216   :  { %1360 = vrot.lane.b32.xlu2 %v1322_v60, %s2031_s2 }
 0x217   :  { %v1052_v17 = vmin.f32 %v1036_v18, 4.1351666  ;;  %v1132_v44 = vmul.f32 %v2463_v23, %v1013_v50  ;;  %v1175_v23 = vpop.permute.xlu0 %1174 }
 0x219   :  { %v1906_v27 = vpop.eup %1905  ;;  %v1236_v51 = vmul.f32 1.442695, %v1052_v17  ;;  %v2665_v26 = vadd.f32 %v1173_v56, %v1132_v44  ;;  %v1177_v56 = vpop.permute.xlu1 %1176 }
 0x21a   :  { %v772_v22 = vpop.f32.mrf.mxu3  ;;  %v1307_v25 = vmul.f32 %v1906_v27, %v2573_v40 }
 0x21b   :  { %1907 = vpow2.f32 %v1236_v51  ;;  %v773_v62 = vadd.f32 %v2561_v36, %v772_v22 }
 0x21c   :  { %v1323_v31 = vmul.f32 0.5, %v1307_v25 }
 0x21d   :  { %799 = vst [vmem:[#allocation9 + $0x48] sm:$0xff] %v773_v62  ;;  %v1037_v63 = vmul.f32 %v2565_v37, %v773_v62  ;;  %v1014_v30 = vmul.f32 %v2623_v14, %v773_v62 }
 0x21e   :  { %1362 = vrot.lane.b32.xlu0 %v1323_v31, %s2031_s2 }
 0x21f   :  { %v1053_v49 = vmin.f32 %v1037_v63, 4.1351666  ;;  %v1133_v7 = vmul.f32 %v2475_v35, %v1014_v30 }
 0x221   :  { %v1908_v4 = vpop.eup %1907  ;;  %v1238_v52 = vmul.f32 1.442695, %v1053_v49  ;;  %v2675_v40 = vadd.f32 %v1175_v23, %v1133_v7  ;;  %v1179_v23 = vpop.permute.xlu2 %1178 }
 0x222   :  { %v775_v2 = vpop.f32.mrf.mxu3  ;;  %v1308_v48 = vmul.f32 %v1908_v4, %v2594_v0 }
 0x223   :  { %1909 = vpow2.f32 %v1238_v52  ;;  %v776_v13 = vadd.f32 %v2561_v36, %v775_v2 }
 0x224   :  { %v1324_v60 = vmul.f32 0.5, %v1308_v48 }
 0x225   :  { %800 = vst [vmem:[#allocation9 + $0x50] sm:$0xff] %v776_v13  ;;  %v1038_v18 = vmul.f32 %v2565_v37, %v776_v13  ;;  %v1015_v50 = vmul.f32 %v2623_v14, %v776_v13 }
 0x226   :  { %1364 = vrot.lane.b32.xlu1 %v1324_v60, %s2031_s2 }
 0x227   :  { %v1054_v35 = vmin.f32 %v1038_v18, 4.1351666  ;;  %v1134_v17 = vmul.f32 %v2514_v53, %v1015_v50 }
 0x229   :  { %v1910_v44 = vpop.eup %1909  ;;  %v1240_v27 = vmul.f32 1.442695, %v1054_v35  ;;  %v2683_v51 = vadd.f32 %v1177_v56, %v1134_v17 }
 0x22a   :  { %v777_v0 = vpop.f32.mrf.mxu3  ;;  %v1309_v22 = vmul.f32 %v1910_v44, %v2605_v58 }
 0x22b   :  { %1911 = vpow2.f32 %v1240_v27  ;;  %v778_v25 = vadd.f32 %v2561_v36, %v777_v0 }
 0x22c   :  { %v1325_v62 = vmul.f32 0.5, %v1309_v22 }
 0x22d   :  { %801 = vst [vmem:[#allocation9 + $0x58] sm:$0xff] %v778_v25  ;;  %v1016_v31 = vmul.f32 %v2623_v14, %v778_v25  ;;  %v1039_v63 = vmul.f32 %v2565_v37, %v778_v25 }
 0x22e   :  { %1366 = vrot.lane.b32.xlu2 %v1325_v62, %s2031_s2 }
 0x22f   :  { %v1055_v30 = vmin.f32 %v1039_v63, 4.1351666  ;;  %v1135_v53 = vmul.f32 %v2473_v33, %v1016_v31  ;;  %v1181_v33 = vpop.permute.xlu0 %1180  ;;  %v1183_v31 = vpop.permute.xlu1 %1182 }
 0x231   :  { %v1912_v49 = vpop.eup %1911  ;;  %v1242_v7 = vmul.f32 1.442695, %v1055_v30  ;;  %v2691_v4 = vadd.f32 %v1179_v23, %v1135_v53 }
 0x232   :  { %v780_v58 = vpop.f32.mrf.mxu3  ;;  %v1310_v52 = vmul.f32 %v1912_v49, %v2586_v12 }
 0x233   :  { %1913 = vpow2.f32 %v1242_v7  ;;  %v781_v2 = vadd.f32 %v2561_v36, %v780_v58 }
 0x234   :  { %v1326_v48 = vmul.f32 0.5, %v1310_v52 }
 0x235   :  { %802 = vst [vmem:[#allocation9 + $0x60] sm:$0xff] %v781_v2  ;;  %v1040_v13 = vmul.f32 %v2565_v37, %v781_v2  ;;  %v1017_v60 = vmul.f32 %v2623_v14, %v781_v2 }
 0x236   :  { %1368 = vrot.lane.b32.xlu0 %v1326_v48, %s2031_s2  ;;  %v1185_v48 = vpop.permute.xlu2 %1184 }
 0x237   :  { %v1056_v18 = vmin.f32 %v1040_v13, 4.1351666  ;;  %v1136_v50 = vmul.f32 %v2485_v10, %v1017_v60 }
 0x239   :  { %v1914_v56 = vpop.eup %1913  ;;  %v1244_v35 = vmul.f32 1.442695, %v1056_v18  ;;  %v2699_v17 = vadd.f32 %v1181_v33, %v1136_v50 }
 0x23a   :  { %v782_v12 = vpop.f32.mrf.mxu3  ;;  %v1311_v44 = vmul.f32 %v1914_v56, %v2607_v28 }
 0x23b   :  { %1915 = vpow2.f32 %v1244_v35  ;;  %v783_v27 = vadd.f32 %v2561_v36, %v782_v12 }
 0x23c   :  { %v1327_v0 = vmul.f32 0.5, %v1311_v44 }
 0x23d   :  { %803 = vst [vmem:[#allocation9 + $0x68] sm:$0xff] %v783_v27  ;;  %v1018_v22 = vmul.f32 %v2623_v14, %v783_v27  ;;  %v1041_v25 = vmul.f32 %v2565_v37, %v783_v27  ;;  %v1187_v27 = vpop.permute.xlu0 %1186 }
 0x23e   :  { %1370 = vrot.lane.b32.xlu1 %v1327_v0, %s2031_s2 }
 0x23f   :  { %v1057_v62 = vmin.f32 %v1041_v25, 4.1351666  ;;  %v1137_v10 = vmul.f32 %v2521_v29, %v1018_v22 }
 0x240   :  { %v1349_v25 = vpop.permute.xlu2 %1348 }
 0x241   :  { %v1916_v63 = vpop.eup %1915  ;;  %v1246_v30 = vmul.f32 1.442695, %v1057_v62  ;;  %v2707_v53 = vadd.f32 %v1183_v31, %v1137_v10 }
 0x242   :  { %v785_v28 = vpop.f32.mrf.mxu3  ;;  %v1312_v23 = vmul.f32 %v1916_v63, %v2618_v3  ;;  %v1005_v3 = vmul.f32 %v2623_v14, %v2568_v43 }
 0x243   :  { %1917 = vpow2.f32 %v1246_v30  ;;  %v786_v49 = vadd.f32 %v2561_v36, %v785_v28 }
 0x244   :  { %v1328_v7 = vmul.f32 0.5, %v1312_v23  ;;  %v1124_v44 = vmul.f32 %v2443_v1, %v1005_v3 }
 0x245   :  { %804 = vst [vmem:[#allocation9 + $0x70] sm:$0xff] %v786_v49  ;;  %v1019_v58 = vmul.f32 %v2623_v14, %v786_v49  ;;  %v1042_v52 = vmul.f32 %v2565_v37, %v786_v49 }
 0x246   :  { %1372 = vrot.lane.b32.xlu2 %v1328_v7, %s2031_s2  ;;  %v1008_v7 = vmul.f32 %v2623_v14, %v2597_v19 }
 0x247   :  { %v1058_v29 = vmin.f32 %v1042_v52, 4.1351666  ;;  %v1138_v2 = vmul.f32 %v2483_v47, %v1019_v58 }
 0x248   :  { %v1127_v52 = vmul.f32 %v2453_v8, %v1008_v7 }
 0x249   :  { %v1918_v13 = vpop.eup %1917  ;;  %v1248_v60 = vmul.f32 1.442695, %v1058_v29  ;;  %v2715_v33 = vadd.f32 %v1185_v48, %v1138_v2 }
 0x24a   :  { %v787_v18 = vpop.f32.mrf.mxu3  ;;  %v1313_v50 = vmul.f32 %v1918_v13, %v2602_v34 }
 0x24b   :  { %1919 = vpow2.f32 %v1248_v60  ;;  %v788_v56 = vadd.f32 %v2561_v36, %v787_v18  ;;  %v1204_v36 = vadd.f32 %v2640_v6, %v1124_v44 }
 0x24c   :  { %v1329_v35 = vmul.f32 0.5, %v1313_v50 }
 0x24d   :  { %805 = vst [vmem:[#allocation9 + $0x78] sm:$0xff] %v788_v56  ;;  %v1043_v12 = vmul.f32 %v2565_v37, %v788_v56  ;;  %v1020_v47 = vmul.f32 %v2623_v14, %v788_v56  ;;  %v1396_v37 = vsub.f32 %v1204_v36, %v1349_v25  ;;  %v1412_v30 = vadd.f32 %v1349_v25, %v1204_v36 }
 0x24e   :  { %1374 = vrot.lane.b32.xlu0 %v1329_v35, %s2031_s2 }
 0x24f   :  { %v1059_v0 = vmin.f32 %v1043_v12, 4.1351666  ;;  %v1139_v43 = vmul.f32 %v2499_v15, %v1020_v47  ;;  %v1006_v15 = vmul.f32 %v2623_v14, %v2576_v57  ;;  %1619 = dma.vmem_to_hbm [thread:$0]  %s1612_s13, 2048, %s1614_s16, [#allocation5], %s2036_s7, %s2036_s7, %s2037_s17  }
 0x251   :  { %v1920_v22 = vpop.eup %1919  ;;  %v1250_v34 = vmul.f32 1.442695, %v1059_v0  ;;  %v2726_v62 = vadd.f32 %v1187_v27, %v1139_v43  ;;  %v1125_v6 = vmul.f32 %v2491_v21, %v1006_v15 }
 0x252   :  { %v1314_v10 = vmul.f32 %v1920_v22, %v2621_v5  ;;  %v1007_v5 = vmul.f32 %v2623_v14, %v2584_v11 }
 0x253   :  { %1921 = vpow2.f32 %v1250_v34  ;;  %v1205_v49 = vadd.f32 %v2647_v54, %v1125_v6  ;;  %v1207_v54 = vadd.f32 %v2652_v39, %v1127_v52  ;;  %v1011_v39 = vmul.f32 %v2623_v14, %v2635_v9 }
 0x254   :  { %v1330_v31 = vmul.f32 0.5, %v1314_v10  ;;  %v1126_v57 = vmul.f32 %v2441_v61, %v1007_v5  ;;  %v1009_v61 = vmul.f32 %v2623_v14, %v2610_v32 }
 0x255   :  { %v1130_v50 = vmul.f32 %v2465_v24, %v1011_v39  ;;  %v1012_v24 = vmul.f32 %v2623_v14, %v2645_v41 }
 0x256   :  { %1376 = vrot.lane.b32.xlu1 %v1330_v31, %s2031_s2  ;;  %1444 = vrot.lane.b32.xlu0 %v1396_v37, %s2034_s6  ;;  %v1206_v21 = vadd.f32 %v2615_v46, %v1126_v57  ;;  %v1128_v13 = vmul.f32 %v2505_v55, %v1009_v61 }
 0x257   :  { %v1210_v56 = vadd.f32 %v2661_v16, %v1130_v50  ;;  %v1131_v47 = vmul.f32 %v2510_v42, %v1012_v24 }
 0x258   :  { %v1355_v11 = vpop.permute.xlu2 %1354  ;;  %v1208_v46 = vadd.f32 %v2657_v38, %v1128_v13 }
 0x259   :  { %v1922_v1 = vpop.eup %1921  ;;  %v1415_v19 = vadd.f32 %v1355_v11, %v1207_v54  ;;  %v1399_v8 = vsub.f32 %v1207_v54, %v1355_v11  ;;  %v1211_v16 = vadd.f32 %v2671_v45, %v1131_v47 }
 0x25a   :  { %v1315_v63 = vmul.f32 %v1922_v1, %v2632_v59 }
 0x25c   :  { %v1331_v28 = vmul.f32 0.5, %v1315_v63 }
 0x25e   :  { %1378 = vrot.lane.b32.xlu2 %v1331_v28, %s2031_s2  ;;  %1508 = vrot.lane.b32.xlu1 %v1412_v30, %s2031_s2 }
 0x260   :  { %v1351_v23 = vpop.permute.xlu0 %1350 }
 0x261   :  { %v1397_v59 = vsub.f32 %v1205_v49, %v1351_v23  ;;  %v1413_v58 = vadd.f32 %v1351_v23, %v1205_v49 }
 0x266   :  { %1510 = vrot.lane.b32.xlu2 %v1413_v58, %s2031_s2  ;;  %1446 = vrot.lane.b32.xlu1 %v1397_v59, %s2034_s6 }
 0x268   :  { %v1353_v29 = vpop.permute.xlu1 %1352 }
 0x269   :  { %v1414_v2 = vadd.f32 %v1353_v29, %v1206_v21  ;;  %v1398_v48 = vsub.f32 %v1206_v21, %v1353_v29 }
 0x26b   :  { %1512 = vrot.lane.b32.xlu0 %v1414_v2, %s2031_s2 }
 0x26e   :  { %1448 = vrot.lane.b32.xlu2 %v1398_v48, %s2034_s6  ;;  %1514 = vrot.lane.b32.xlu1 %v1415_v19, %s2031_s2 }
 0x270   :  { %v1361_v32 = vpop.permute.xlu2 %1360 }
 0x271   :  { %v1418_v35 = vadd.f32 %v1361_v32, %v1210_v56  ;;  %v1402_v9 = vsub.f32 %v1210_v56, %v1361_v32 }
 0x273   :  { %1450 = vrot.lane.b32.xlu0 %v1399_v8, %s2034_s6 }
 0x278   :  { %v1357_v60 = vpop.permute.xlu0 %1356 }
 0x279   :  { %v1400_v3 = vsub.f32 %v1208_v46, %v1357_v60  ;;  %v1416_v18 = vadd.f32 %v1357_v60, %v1208_v46 }
 0x27b   :  { %1516 = vrot.lane.b32.xlu2 %v1416_v18, %s2031_s2  ;;  %1452 = vrot.lane.b32.xlu1 %v1400_v3, %s2034_s6 }
 0x280   :  { %v1359_v55 = vpop.permute.xlu1 %1358 }
 0x281   :  { %v1401_v12 = vsub.f32 %v2629_v20, %v1359_v55  ;;  %v1417_v38 = vadd.f32 %v1359_v55, %v2629_v20 }
 0x283   :  { %1454 = vrot.lane.b32.xlu2 %v1401_v12, %s2034_s6  ;;  %1520 = vrot.lane.b32.xlu1 %v1418_v35, %s2031_s2 }
 0x284   :  { %1518 = vrot.lane.b32.xlu0 %v1417_v38, %s2031_s2 }
 0x288   :  { %v1367_v20 = vpop.permute.xlu2 %1366 }
 0x289   :  { %v1421_v22 = vadd.f32 %v1367_v20, %v2675_v40  ;;  %v1405_v42 = vsub.f32 %v2675_v40, %v1367_v20 }
 0x28c   :  { %1456 = vrot.lane.b32.xlu0 %v1402_v9, %s2034_s6 }
 0x290   :  { %v1363_v44 = vpop.permute.xlu0 %1362 }
 0x291   :  { %v1403_v27 = vsub.f32 %v1211_v16, %v1363_v44  ;;  %v1419_v0 = vadd.f32 %v1363_v44, %v1211_v16 }
 0x293   :  { %1522 = vrot.lane.b32.xlu2 %v1419_v0, %s2031_s2  ;;  %1458 = vrot.lane.b32.xlu1 %v1403_v27, %s2034_s6 }
 0x298   :  { %v1365_v43 = vpop.permute.xlu1 %1364 }
 0x299   :  { %v1404_v14 = vsub.f32 %v2665_v26, %v1365_v43  ;;  %v1420_v41 = vadd.f32 %v1365_v43, %v2665_v26 }
 0x29b   :  { %1460 = vrot.lane.b32.xlu2 %v1404_v14, %s2034_s6  ;;  %1526 = vrot.lane.b32.xlu1 %v1421_v22, %s2031_s2 }
 0x29c   :  { %1524 = vrot.lane.b32.xlu0 %v1420_v41, %s2031_s2 }
 0x2a0   :  { %v1373_v26 = vpop.permute.xlu2 %1372 }
 0x2a1   :  { %v1424_v10 = vadd.f32 %v1373_v26, %v2699_v17  ;;  %v1408_v40 = vsub.f32 %v2699_v17, %v1373_v26 }
 0x2a4   :  { %1462 = vrot.lane.b32.xlu0 %v1405_v42, %s2034_s6 }
 0x2a8   :  { %v1369_v45 = vpop.permute.xlu0 %1368 }
 0x2a9   :  { %v1406_v25 = vsub.f32 %v2683_v51, %v1369_v45  ;;  %v1422_v34 = vadd.f32 %v1369_v45, %v2683_v51 }
 0x2ab   :  { %1528 = vrot.lane.b32.xlu2 %v1422_v34, %s2031_s2  ;;  %1464 = vrot.lane.b32.xlu1 %v1406_v25, %s2034_s6 }
 0x2b0   :  { %v1371_v36 = vpop.permute.xlu1 %1370 }
 0x2b1   :  { %v1407_v37 = vsub.f32 %v2691_v4, %v1371_v36  ;;  %v1423_v31 = vadd.f32 %v1371_v36, %v2691_v4 }
 0x2b3   :  { %1466 = vrot.lane.b32.xlu2 %v1407_v37, %s2034_s6  ;;  %1532 = vrot.lane.b32.xlu1 %v1424_v10, %s2031_s2 }
 0x2b4   :  { %1530 = vrot.lane.b32.xlu0 %v1423_v31, %s2031_s2 }
 0x2b8   :  { %v1379_v51 = vpop.permute.xlu2 %1378 }
 0x2b9   :  { %v1411_v15 = vsub.f32 %v2726_v62, %v1379_v51  ;;  %v1427_v63 = vadd.f32 %v1379_v51, %v2726_v62 }
 0x2bc   :  { %1468 = vrot.lane.b32.xlu0 %v1408_v40, %s2034_s6 }
 0x2c0   :  { %v1375_v1 = vpop.permute.xlu0 %1374  ;;  %v1511_v7 = vpop.permute.xlu2 %1510 }
 0x2c1   :  { %v1409_v4 = vsub.f32 %v2707_v53, %v1375_v1  ;;  %v1425_v23 = vadd.f32 %v1375_v1, %v2707_v53 }
 0x2c3   :  { %1470 = vrot.lane.b32.xlu1 %v1409_v4, %s2034_s6 }
 0x2c4   :  { %1474 = vrot.lane.b32.xlu0 %v1411_v15, %s2034_s6 }
 0x2c8   :  { %v1377_v17 = vpop.permute.xlu1 %1376  ;;  %v1445_v6 = vpop.permute.xlu0 %1444 }
 0x2c9   :  { %v1410_v30 = vsub.f32 %v2715_v33, %v1377_v17  ;;  %v1426_v28 = vadd.f32 %v1377_v17, %v2715_v33  ;;  %v1449_v53 = vpop.permute.xlu2 %1448 }
 0x2cb   :  { %1472 = vrot.lane.b32.xlu2 %v1410_v30, %s2034_s6  ;;  %1538 = vrot.lane.b32.xlu1 %v1427_v63, %s2031_s2 }
 0x2cc   :  { %1536 = vrot.lane.b32.xlu0 %v1426_v28, %s2031_s2 }
 0x2d0   :  { %v1509_v5 = vpop.permute.xlu1 %1508 }
 0x2d1   :  { %v1557_v49 = vsel %vm1556_vm2, %v1445_v6, %v1509_v5 }
 0x2d2   :  { %v1574_v62 = vsel %vm1573_vm3, %v1557_v49, %v1509_v5 }
 0x2d3   :  { %1591 = vst.msk [vmem:[%s2915_s9] sm:$0xff] %vm1590_vm4, %v1574_v62  ;;  %1534 = vrot.lane.b32.xlu2 %v1425_v23, %s2031_s2 }
 0x2d5   :  { %v1517_v19 = vpop.permute.xlu2 %1516 }
 0x2d8   :  { %v1447_v33 = vpop.permute.xlu1 %1446 }
 0x2d9   :  { %v1558_v57 = vsel %vm1556_vm2, %v1447_v33, %v1511_v7 }
 0x2da   :  { %v1575_v59 = vsel %vm1573_vm3, %v1558_v57, %v1511_v7 }
 0x2db   :  { %1592 = vst.msk [vmem:[%s2915_s9 + $0x8] sm:$0xff] %vm1590_vm4, %v1575_v59 }
 0x2dd   :  { %v1513_v58 = vpop.permute.xlu0 %1512  ;;  %v1455_v13 = vpop.permute.xlu2 %1454 }
 0x2de   :  { %v1559_v52 = vsel %vm1556_vm2, %v1449_v53, %v1513_v58 }
 0x2df   :  { %v1576_v21 = vsel %vm1573_vm3, %v1559_v52, %v1513_v58 }
 0x2e0   :  { %1593 = vst.msk [vmem:[%s2915_s9 + $0x10] sm:$0xff] %vm1590_vm4, %v1576_v21  ;;  %v1515_v29 = vpop.permute.xlu1 %1514 }
 0x2e5   :  { %v1451_v11 = vpop.permute.xlu0 %1450 }
 0x2e6   :  { %v1560_v2 = vsel %vm1556_vm2, %v1451_v11, %v1515_v29 }
 0x2e7   :  { %v1577_v54 = vsel %vm1573_vm3, %v1560_v2, %v1515_v29 }
 0x2e8   :  { %1594 = vst.msk [vmem:[%s2915_s9 + $0x18] sm:$0xff] %vm1590_vm4, %v1577_v54 }
 0x2ed   :  { %v1453_v48 = vpop.permute.xlu1 %1452  ;;  %v1523_v56 = vpop.permute.xlu2 %1522 }
 0x2ee   :  { %v1561_v61 = vsel %vm1556_vm2, %v1453_v48, %v1517_v19 }
 0x2ef   :  { %v1578_v8 = vsel %vm1573_vm3, %v1561_v61, %v1517_v19 }
 0x2f0   :  { %1595 = vst.msk [vmem:[%s2915_s9 + $0x20] sm:$0xff] %vm1590_vm4, %v1578_v8 }
 0x2f5   :  { %v1521_v3 = vpop.permute.xlu1 %1520  ;;  %v1461_v38 = vpop.permute.xlu2 %1460 }
 0x2f6   :  { %v1519_v46 = vpop.permute.xlu0 %1518 }
 0x2f7   :  { %v1562_v39 = vsel %vm1556_vm2, %v1455_v13, %v1519_v46 }
 0x2f8   :  { %v1579_v60 = vsel %vm1573_vm3, %v1562_v39, %v1519_v46 }
 0x2f9   :  { %1596 = vst.msk [vmem:[%s2915_s9 + $0x28] sm:$0xff] %vm1590_vm4, %v1579_v60 }
 0x2fe   :  { %v1457_v18 = vpop.permute.xlu0 %1456 }
 0x2ff   :  { %v1563_v50 = vsel %vm1556_vm2, %v1457_v18, %v1521_v3 }
 0x300   :  { %v1580_v32 = vsel %vm1573_vm3, %v1563_v50, %v1521_v3 }
 0x301   :  { %1597 = vst.msk [vmem:[%s2915_s9 + $0x30] sm:$0xff] %vm1590_vm4, %v1580_v32 }
 0x305   :  { %v1459_v55 = vpop.permute.xlu1 %1458  ;;  %v1529_v20 = vpop.permute.xlu2 %1528 }
 0x306   :  { %v1564_v35 = vsel %vm1556_vm2, %v1459_v55, %v1523_v56 }
 0x307   :  { %v1581_v12 = vsel %vm1573_vm3, %v1564_v35, %v1523_v56 }
 0x308   :  { %1598 = vst.msk [vmem:[%s2915_s9 + $0x38] sm:$0xff] %vm1590_vm4, %v1581_v12 }
 0x30d   :  { %v1527_v16 = vpop.permute.xlu1 %1526  ;;  %v1467_v41 = vpop.permute.xlu2 %1466 }
 0x30e   :  { %v1525_v24 = vpop.permute.xlu0 %1524 }
 0x30f   :  { %v1565_v9 = vsel %vm1556_vm2, %v1461_v38, %v1525_v24 }
 0x310   :  { %v1582_v47 = vsel %vm1573_vm3, %v1565_v9, %v1525_v24 }
 0x311   :  { %1599 = vst.msk [vmem:[%s2915_s9 + $0x40] sm:$0xff] %vm1590_vm4, %v1582_v47 }
 0x316   :  { %v1463_v44 = vpop.permute.xlu0 %1462 }
 0x317   :  { %v1566_v27 = vsel %vm1556_vm2, %v1463_v44, %v1527_v16 }
 0x318   :  { %v1583_v0 = vsel %vm1573_vm3, %v1566_v27, %v1527_v16 }
 0x319   :  { %1600 = vst.msk [vmem:[%s2915_s9 + $0x48] sm:$0xff] %vm1590_vm4, %v1583_v0 }
 0x31d   :  { %v1465_v43 = vpop.permute.xlu1 %1464 }
 0x31e   :  { %v1567_v22 = vsel %vm1556_vm2, %v1465_v43, %v1529_v20 }
 0x31f   :  { %v1584_v14 = vsel %vm1573_vm3, %v1567_v22, %v1529_v20 }
 0x320   :  { %1601 = vst.msk [vmem:[%s2915_s9 + $0x50] sm:$0xff] %vm1590_vm4, %v1584_v14 }
 0x325   :  { %v1473_v34 = vpop.permute.xlu2 %1472  ;;  %v1533_v26 = vpop.permute.xlu1 %1532 }
 0x326   :  { %v1531_v42 = vpop.permute.xlu0 %1530 }
 0x327   :  { %v1568_v45 = vsel %vm1556_vm2, %v1467_v41, %v1531_v42 }
 0x328   :  { %v1585_v25 = vsel %vm1573_vm3, %v1568_v45, %v1531_v42 }
 0x329   :  { %1602 = vst.msk [vmem:[%s2915_s9 + $0x58] sm:$0xff] %vm1590_vm4, %v1585_v25 }
 0x32d   :  { %v1535_v31 = vpop.permute.xlu2 %1534 }
 0x32e   :  { %v1469_v36 = vpop.permute.xlu0 %1468 }
 0x32f   :  { %v1569_v10 = vsel %vm1556_vm2, %v1469_v36, %v1533_v26 }
 0x330   :  { %v1586_v37 = vsel %vm1573_vm3, %v1569_v10, %v1533_v26 }
 0x331   :  { %1603 = vst.msk [vmem:[%s2915_s9 + $0x60] sm:$0xff] %vm1590_vm4, %v1586_v37 }
 0x335   :  { %v1471_v40 = vpop.permute.xlu1 %1470 }
 0x336   :  { %v1570_v51 = vsel %vm1556_vm2, %v1471_v40, %v1535_v31  ;;  %v1475_v1 = vpop.permute.xlu0 %1474 }
 0x337   :  { %v1587_v4 = vsel %vm1573_vm3, %v1570_v51, %v1535_v31 }
 0x338   :  { %1604 = vst.msk [vmem:[%s2915_s9 + $0x68] sm:$0xff] %vm1590_vm4, %v1587_v4 }
 0x33d   :  { %v1539_v15 = vpop.permute.xlu1 %1538 }
 0x33e   :  { %v1572_v17 = vsel %vm1556_vm2, %v1475_v1, %v1539_v15  ;;  %v1537_v63 = vpop.permute.xlu0 %1536 }
 0x33f   :  { %v1589_v30 = vsel %vm1573_vm3, %v1572_v17, %v1539_v15  ;;  %v1571_v28 = vsel %vm1556_vm2, %v1473_v34, %v1537_v63 }
 0x340   :  { %1606 = vst.msk [vmem:[%s2915_s9 + $0x78] sm:$0xff] %vm1590_vm4, %v1589_v30  ;;  %v1588_v6 = vsel %vm1573_vm3, %v1571_v28, %v1537_v63 }
 0x341   :  { %1605 = vst.msk [vmem:[%s2915_s9 + $0x70] sm:$0xff] %vm1590_vm4, %v1588_v6 }
 0x342   :  { %2023 = dma.done.wait [#allocation5], 2048  }
 0x343   :  { %2024 = vsyncadd [#allocation5], 4294965248 }
 0x344   :  { %1628 = vsyncpa [#allocation4], 1 }
 0x345   :  { %1629 = vsyncpa [#allocation7], 1 }
 0x346   :  { %1630 = vsyncpa [#allocation5], 1 }

</bundles_post_ra>
